<compile_context>
chip_gen: v7x
topology: tpu7x:2x2x1
jax: 0.10.0
libtpu: 0.0.40
codegen_flags: <defaults>
</compile_context>

<pallas_src>
import functools

import jax
import jax.numpy as jnp
from jax import lax
from jax.experimental import pallas as pl
from jax.experimental.pallas import tpu as pltpu

EPS = 1e-5


# --------------------------------------------------------------------------- #
# helpers
# --------------------------------------------------------------------------- #
def _round_up(x, m):
    return ((x + m - 1) // m) * m


def _row_tile(M, cap):
    """Largest multiple-of-8 divisor of M that is <= cap (fallback: M)."""
    cap = max(8, min(cap, M))
    t = (cap // 8) * 8
    while t >= 8:
        if M % t == 0:
            return t
        t -= 8
    # TODO(synk): switch to a pl.cdiv grid + masked last tile so awkward M never
    # degenerates to a single giant block.
    return M


def _pick_tm(M, bytes_per_row, vmem_budget, cap):
    """Row tile bounded so ~double-buffered live blocks stay inside VMEM."""
    budget_rows = int(0.6 * vmem_budget) // max(2 * bytes_per_row, 1)
    return _row_tile(M, min(cap, max(budget_rows, 64)))


def _vmem_limit_bytes():
    """Per-generation scoped-VMEM request (v5e/v6e: 128 MiB phys, v7x: 64 MiB)."""
    try:
        kind = jax.devices()[0].device_kind.lower()
    except Exception:
        kind = ""
    if "v7" in kind:
        return 48 * 1024 * 1024
    if "v6" in kind or "v5" in kind:
        return 100 * 1024 * 1024
    return None          # other chips / CPU interpret: leave compiler default


def _const_spec(shape):
    """Spec for operands whose block never changes across the grid: single-
    buffer them (default double-buffering wastes VMEM on constant weights)."""
    index_map = lambda *_: (0,) * len(shape)
    if hasattr(pl, "Buffered"):
        try:
            return pl.BlockSpec(shape, index_map, pipeline_mode=pl.Buffered(1))
        except (TypeError, ValueError):
            pass
    return pl.BlockSpec(shape, index_map)


def _pad_vec(v, c):
    return jnp.pad(v.astype(jnp.float32), (0, c - v.shape[0])).reshape(1, c)


def _stats_rows(t, nrows):
    """(nrows, C) block: row0 = sum over rows, row1 = sum of squares, rest 0."""
    s = jnp.sum(t, axis=0, keepdims=True)
    q = jnp.sum(t * t, axis=0, keepdims=True)
    z = jnp.zeros((nrows - 2, t.shape[1]), jnp.float32)
    return jnp.concatenate([s, q, z], axis=0)


def _bn_scale_bias(stats, count, gamma_p, beta_p):
    """Reduce per-tile partial stats -> per-channel (scale, bias) rows."""
    # TODO(synk): at full ResNet scale consider mean-shifted sums to reduce
    # E[x^2]-E[x]^2 cancellation; fine at these magnitudes.
    c = stats.shape[-1]
    st = stats.reshape(-1, 8, c)
    s = jnp.sum(st[:, 0, :], axis=0)
    q = jnp.sum(st[:, 1, :], axis=0)
    mean = s / count
    var = jnp.maximum(q / count - mean * mean, 0.0)       # biased variance
    scale = gamma_p.reshape(-1) * lax.rsqrt(var + EPS)
    bias = beta_p.reshape(-1) - mean * scale
    return scale.reshape(1, c), bias.reshape(1, c)


# --------------------------------------------------------------------------- #
# kernels
# --------------------------------------------------------------------------- #
def _stage1_kernel(has_ds, *refs):
    """conv1 (1x1) and (optionally) downsample 1x1, reusing the same x tile."""
    if has_ds:
        x_ref, w1_ref, wd_ref, t1_ref, d_ref, st1_ref, std_ref = refs
    else:
        x_ref, w1_ref, t1_ref, st1_ref = refs
    xb = x_ref[...].astype(jnp.bfloat16)                  # bf16 MXU operand
    t1 = jnp.dot(xb, w1_ref[...], preferred_element_type=jnp.float32)
    st1_ref[...] = _stats_rows(t1, st1_ref.shape[0])      # stats from f32 acc
    t1_ref[...] = t1.astype(t1_ref.dtype)                 # bf16 to HBM
    if has_ds:
        d = jnp.dot(xb, wd_ref[...], preferred_element_type=jnp.float32)
        std_ref[...] = _stats_rows(d, std_ref.shape[0])
        d_ref[...] = d.astype(d_ref.dtype)


def _stage2_kernel(t1_ref, sc_ref, bs_ref, w2_ref, t2_ref, st_ref):
    """BN1 + ReLU, then the 3x3 conv as three dy-grouped shifted matmuls.

    For each kernel row dy, the three dx taps are lane-adjacent (K = 3*C) and
    the LHS is a contiguous row-slab of the zero-padded activation, so there is
    no (Ho*Wo, 9*C) im2col temporary and no persistent scratch/halo bookkeeping.
    """
    Ho, Wo, C = t1_ref.shape[1], t1_ref.shape[2], t1_ref.shape[3]
    # BN1 + ReLU in f32, then bf16 for the MXU
    u = jnp.maximum(t1_ref[0].astype(jnp.float32) * sc_ref[...] + bs_ref[...],
                    0.0).astype(jnp.bfloat16)
    # zero-pad 1 pixel on each side (value-level, compiler-managed VMEM temp)
    zc = jnp.zeros((Ho, 1, C), jnp.bfloat16)
    zr = jnp.zeros((1, Wo + 2, C), jnp.bfloat16)
    up = jnp.concatenate([zc, u, zc], axis=1)             # (Ho, Wo+2, C)
    up = jnp.concatenate([zr, up, zr], axis=0)            # (Ho+2, Wo+2, C)
    acc = jnp.zeros((Ho * Wo, C), jnp.float32)
    for dy in range(3):                                   # static unroll
        slab = up[dy:dy + Ho]                             # (Ho, Wo+2, C)
        lhs = jnp.concatenate(
            [slab[:, dx:dx + Wo, :] for dx in range(3)], axis=-1)
        lhs = lhs.reshape(Ho * Wo, 3 * C)                 # K = 3*C operand
        w = w2_ref[dy * 3 * C:(dy + 1) * 3 * C, :]
        acc = acc + jnp.dot(lhs, w, preferred_element_type=jnp.float32)
    st_ref[...] = _stats_rows(acc, st_ref.shape[0])
    t2_ref[...] = acc.reshape(1, Ho, Wo, C).astype(t2_ref.dtype)


def _stage3_kernel(t2_ref, sc_ref, bs_ref, w3_ref, t3_ref, st_ref):
    """BN2 + ReLU + conv3 (1x1) with fused stats epilogue."""
    v = jnp.maximum(t2_ref[...].astype(jnp.float32) * sc_ref[...] + bs_ref[...],
                    0.0)
    t3 = jnp.dot(v.astype(jnp.bfloat16), w3_ref[...],
                 preferred_element_type=jnp.float32)
    st_ref[...] = _stats_rows(t3, st_ref.shape[0])
    t3_ref[...] = t3.astype(t3_ref.dtype)


def _stage4_kernel(has_ds, *refs):
    """BN3 + (downsample BN | identity) + residual add + ReLU (all f32)."""
    if has_ds:
        t3_ref, sc3_ref, bs3_ref, id_ref, scd_ref, bsd_ref, o_ref = refs
        idn = id_ref[...].astype(jnp.float32) * scd_ref[...] + bsd_ref[...]
    else:
        t3_ref, sc3_ref, bs3_ref, id_ref, o_ref = refs
        idn = id_ref[...].astype(jnp.float32)
    o = jnp.maximum(
        t3_ref[...].astype(jnp.float32) * sc3_ref[...] + bs3_ref[...] + idn, 0.0)
    o_ref[...] = o[:, :o_ref.shape[-1]]                   # drop channel pad


# --------------------------------------------------------------------------- #
# wrapper
# --------------------------------------------------------------------------- #
def bottleneck_forward(x_nhwc, params, stride=1, row_tile=512):
    """x_nhwc: [N,H,W,Cin] f32. Returns [N, H//stride, W//stride, Cout] f32."""
    N, H, W, Cin = x_nhwc.shape
    Cmid = params["w1"].shape[-1]
    Cout = params["w3"].shape[-1]
    has_ds = (stride != 1) or (Cin != Cout)

    Cinp = _round_up(Cin, 128)
    Cmidp = _round_up(Cmid, 128)
    Coutp = _round_up(Cout, 128)

    # ---- input prep: avoid host HBM passes over x whenever possible ----
    # Stride lives on conv1 / downsample (1x1 convs), as in the reference
    # module, so it is a spatial subsample followed by a matmul.
    # TODO(synk): for stride>1 fold the subsample into stage-1's index_map
    # (1-row blocks give element-granular block indices) instead of this copy.
    x_s = x_nhwc if stride == 1 else x_nhwc[:, ::stride, ::stride, :]
    Ho, Wo = x_s.shape[1], x_s.shape[2]
    M = N * Ho * Wo
    xm = x_s.reshape(M, Cin)                              # free reshape
    host_pass = (stride != 1) or (Cinp != Cin)
    if Cinp != Cin:
        xm = jnp.pad(xm, ((0, 0), (0, Cinp - Cin)))
    if host_pass and has_ds:
        # copy happens anyway -> emit it bf16 (halves stage-1's read); without a
        # downsample branch x is also the residual, keep it f32 for exactness.
        xm = xm.astype(jnp.bfloat16)

    # channel-padded (lane-dense) weights in bf16 for the MXU
    w1 = jnp.pad(params["w1"].reshape(Cin, Cmid),
                 ((0, Cinp - Cin), (0, Cmidp - Cmid))).astype(jnp.bfloat16)
    w2 = jnp.pad(params["w2"],
                 ((0, 0), (0, 0), (0, Cmidp - Cmid), (0, Cmidp - Cmid)))
    w2 = w2.reshape(9 * Cmidp, Cmidp).astype(jnp.bfloat16)   # (ky, kx, cin)-major
    w3 = jnp.pad(params["w3"].reshape(Cmid, Cout),
                 ((0, Cmidp - Cmid), (0, Coutp - Cout))).astype(jnp.bfloat16)

    g1, be1 = _pad_vec(params["g1"], Cmidp), _pad_vec(params["b1"], Cmidp)
    g2, be2 = _pad_vec(params["g2"], Cmidp), _pad_vec(params["b2"], Cmidp)
    g3, be3 = _pad_vec(params["g3"], Coutp), _pad_vec(params["b3"], Coutp)

    vmem_limit = _vmem_limit_bytes()
    vmem_budget = vmem_limit if vmem_limit is not None else 64 * 1024 * 1024
    cparams = pltpu.CompilerParams(
        dimension_semantics=("parallel",),        # megacore sharding on v7x
        vmem_limit_bytes=vmem_limit)

    row_spec = lambda tm, c: pl.BlockSpec((tm, c), lambda i: (i, 0))
    stat_spec = lambda c: pl.BlockSpec((8, c), lambda i: (i, 0))

    # ---- stage 1: conv1 (+ downsample) with fused BN-stats epilogues ----
    xbytes = 2 if xm.dtype == jnp.bfloat16 else 4
    bpr1 = xbytes * Cinp + 2 * Cmidp + (2 * Coutp if has_ds else 0)
    tm1 = _pick_tm(M, bpr1, vmem_budget, row_tile)
    nt1 = M // tm1
    # TODO(synk): for Coutp >= 1024 on v7x, add an output-channel grid axis for
    # the downsample / conv3 matmuls to bound per-step output blocks further.
    if has_ds:
        wd = jnp.pad(params["wd"].reshape(Cin, Cout),
                     ((0, Cinp - Cin), (0, Coutp - Cout))).astype(jnp.bfloat16)
        gd, bed = _pad_vec(params["gd"], Coutp), _pad_vec(params["bd"], Coutp)
        t1, dsb, st1, std = pl.pallas_call(
            functools.partial(_stage1_kernel, True),
            out_shape=(jax.ShapeDtypeStruct((M, Cmidp), jnp.bfloat16),
                       jax.ShapeDtypeStruct((M, Coutp), jnp.bfloat16),
                       jax.ShapeDtypeStruct((nt1 * 8, Cmidp), jnp.float32),
                       jax.ShapeDtypeStruct((nt1 * 8, Coutp), jnp.float32)),
            grid=(nt1,),
            in_specs=[row_spec(tm1, Cinp),
                      _const_spec((Cinp, Cmidp)),
                      _const_spec((Cinp, Coutp))],
            out_specs=(row_spec(tm1, Cmidp), row_spec(tm1, Coutp),
                       stat_spec(Cmidp), stat_spec(Coutp)),
            compiler_params=cparams,
        )(xm, w1, wd)
    else:
        t1, st1 = pl.pallas_call(
            functools.partial(_stage1_kernel, False),
            out_shape=(jax.ShapeDtypeStruct((M, Cmidp), jnp.bfloat16),
                       jax.ShapeDtypeStruct((nt1 * 8, Cmidp), jnp.float32)),
            grid=(nt1,),
            in_specs=[row_spec(tm1, Cinp), _const_spec((Cinp, Cmidp))],
            out_specs=(row_spec(tm1, Cmidp), stat_spec(Cmidp)),
            compiler_params=cparams,
        )(xm, w1)

    sc1, bs1 = _bn_scale_bias(st1, M, g1, be1)

    # ---- stage 2: BN1 + ReLU + 3x3 conv (dy-grouped shifted matmuls) ----
    # TODO(synk): strip-tile over Ho (grid=(N, Ho//strip) with 1-row halo input
    # specs) to bound VMEM and feed both v7x TensorCores when per-device N is
    # small / spatial size is large.
    t2, st2 = pl.pallas_call(
        _stage2_kernel,
        out_shape=(jax.ShapeDtypeStruct((N, Ho, Wo, Cmidp), jnp.bfloat16),
                   jax.ShapeDtypeStruct((N * 8, Cmidp), jnp.float32)),
        grid=(N,),
        in_specs=[pl.BlockSpec((1, Ho, Wo, Cmidp), lambda n: (n, 0, 0, 0)),
                  _const_spec((1, Cmidp)), _const_spec((1, Cmidp)),
                  _const_spec((9 * Cmidp, Cmidp))],
        out_specs=(pl.BlockSpec((1, Ho, Wo, Cmidp), lambda n: (n, 0, 0, 0)),
                   pl.BlockSpec((8, Cmidp), lambda n: (n, 0))),
        compiler_params=cparams,
    )(t1.reshape(N, Ho, Wo, Cmidp), sc1, bs1, w2)

    sc2, bs2 = _bn_scale_bias(st2, M, g2, be2)

    # ---- stage 3: BN2 + ReLU + conv3 (1x1) ----
    bpr3 = 2 * Cmidp + 2 * Coutp
    tm3 = _pick_tm(M, bpr3, vmem_budget, row_tile)
    nt3 = M // tm3
    t3, st3 = pl.pallas_call(
        _stage3_kernel,
        out_shape=(jax.ShapeDtypeStruct((M, Coutp), jnp.bfloat16),
                   jax.ShapeDtypeStruct((nt3 * 8, Coutp), jnp.float32)),
        grid=(nt3,),
        in_specs=[row_spec(tm3, Cmidp), _const_spec((1, Cmidp)),
                  _const_spec((1, Cmidp)), _const_spec((Cmidp, Coutp))],
        out_specs=(row_spec(tm3, Coutp), stat_spec(Coutp)),
        compiler_params=cparams,
    )(t2.reshape(M, Cmidp), sc2, bs2, w3)

    sc3, bs3 = _bn_scale_bias(st3, M, g3, be3)

    # ---- stage 4: BN3 + (downsample BN | identity) + residual + ReLU ----
    if has_ds:
        scd, bsd = _bn_scale_bias(std, M, gd, bed)
        ident, extra = dsb, (scd, bsd)
        extra_specs = [_const_spec((1, Coutp)), _const_spec((1, Coutp))]
        id_bytes = 2
    else:
        ident, extra, extra_specs = xm, (), []   # Cin == Cout, stride == 1
        id_bytes = 2 if xm.dtype == jnp.bfloat16 else 4
    bpr4 = 2 * Coutp + id_bytes * Coutp + 4 * Cout
    tm4 = _pick_tm(M, bpr4, vmem_budget, max(row_tile, 1024))  # mem-bound stage
    nt4 = M // tm4
    out = pl.pallas_call(
        functools.partial(_stage4_kernel, has_ds),
        out_shape=jax.ShapeDtypeStruct((M, Cout), jnp.float32),
        grid=(nt4,),
        in_specs=[row_spec(tm4, Coutp), _const_spec((1, Coutp)),
                  _const_spec((1, Coutp)), row_spec(tm4, Coutp)] + extra_specs,
        out_specs=row_spec(tm4, Cout),            # unpadded: no host slice pass
        compiler_params=cparams,
    )(t3, sc3, bs3, ident, *extra)

    return out.reshape(N, Ho, Wo, Cout)


# --------------------------------------------------------------------------- #
# pure-JAX reference (NHWC, PyTorch training-mode BN semantics).
# Same numeric contract as the kernels: bf16 conv operands, f32 accumulation,
# f32 BatchNorm (batch stats, biased variance, eps=1e-5).
# --------------------------------------------------------------------------- #
def bottleneck_ref(x, params, stride=1):
    def conv(a, w, s, pad):
        return lax.conv_general_dilated(
            a.astype(jnp.bfloat16), w.astype(jnp.bfloat16), (s, s), pad,
            dimension_numbers=("NHWC", "HWIO", "NHWC"),
            preferred_element_type=jnp.float32)

    def bn(a, g, b):
        mean = jnp.mean(a, axis=(0, 1, 2), keepdims=True)
        var = jnp.mean((a - mean) ** 2, axis=(0, 1, 2), keepdims=True)
        return (a - mean) * lax.rsqrt(var + EPS) * g + b

    Cin = x.shape[-1]
    Cout = params["w3"].shape[-1]
    out = jax.nn.relu(bn(conv(x, params["w1"], stride, "VALID"),
                         params["g1"], params["b1"]))
    out = jax.nn.relu(bn(conv(out, params["w2"], 1, ((1, 1), (1, 1))),
                         params["g2"], params["b2"]))
    out = bn(conv(out, params["w3"], 1, "VALID"), params["g3"], params["b3"])
    if stride != 1 or Cin != Cout:
        identity = bn(conv(x, params["wd"], stride, "VALID"),
                      params["gd"], params["bd"])
    else:
        identity = x
    return jax.nn.relu(out + identity)


# --------------------------------------------------------------------------- #
if __name__ == "__main__":
    N, H, W = 2, 16, 16
    in_channels, out_channels, stride = 16, 32, 1    # downsample branch present
    cmid = out_channels // 4

    key = jax.random.PRNGKey(0)
    ks = jax.random.split(key, 10)
    params = {
        "w1": jax.random.normal(ks[0], (1, 1, in_channels, cmid), jnp.float32) * 0.1,
        "g1": 1.0 + 0.1 * jax.random.normal(ks[5], (cmid,), jnp.float32),
        "b1": 0.1 * jax.random.normal(ks[6], (cmid,), jnp.float32),
        "w2": jax.random.normal(ks[1], (3, 3, cmid, cmid), jnp.float32) * 0.1,
        "g2": 1.0 + 0.1 * jax.random.normal(ks[7], (cmid,), jnp.float32),
        "b2": 0.1 * jax.random.normal(ks[8], (cmid,), jnp.float32),
        "w3": jax.random.normal(ks[2], (1, 1, cmid, out_channels), jnp.float32) * 0.1,
        "g3": jnp.ones((out_channels,), jnp.float32),
        "b3": jnp.zeros((out_channels,), jnp.float32),
        "wd": jax.random.normal(ks[3], (1, 1, in_channels, out_channels), jnp.float32) * 0.1,
        "gd": 1.0 + 0.1 * jax.random.normal(ks[9], (out_channels,), jnp.float32),
        "bd": jnp.zeros((out_channels,), jnp.float32),
    }

    # PyTorch input layout is NCHW; transpose to NHWC for the TPU kernels.
    x_nchw = jax.random.normal(ks[4], (N, in_channels, H, W), jnp.float32)
    x_nhwc = jnp.transpose(x_nchw, (0, 2, 3, 1))

    out = jax.block_until_ready(bottleneck_forward(x_nhwc, params, stride=stride))
    ref = bottleneck_ref(x_nhwc, params, stride=stride)

    assert out.shape == (N, H // stride, W // stride, out_channels), out.shape
    # bf16 MXU operands + bf16 inter-stage activations (f32 accumulation / BN /
    # residual) against a matched bf16-operand reference -> mixed-precision
    # tolerance spanning three convs and four batch-norms.
    assert bool(jnp.allclose(out, ref, atol=5e-2, rtol=3e-2)), \
        float(jnp.max(jnp.abs(out - ref)))
    print("KERNEL_OK")
</pallas_src>

<mosaic_0001>
module attributes {stable_mosaic.version = 11 : i64} {
  func.func @_stage1_kernel(%arg0: i32, %arg1: memref<512x128xbf16, #tpu.memory_space<vmem>>, %arg2: memref<128x128xbf16, #tpu.memory_space<vmem>>, %arg3: memref<128x128xbf16, #tpu.memory_space<vmem>>, %arg4: memref<512x128xbf16, #tpu.memory_space<vmem>>, %arg5: memref<512x128xbf16, #tpu.memory_space<vmem>>, %arg6: memref<8x128xf32, #tpu.memory_space<vmem>>, %arg7: memref<8x128xf32, #tpu.memory_space<vmem>>) attributes {dimension_semantics = [#tpu.dimension_semantics<parallel>], iteration_bounds = array<i64: 1>, scalar_prefetch = 0 : i64, scratch_operands = 0 : i64, tpu.core_type = #tpu.core_type<tc>, window_params = [{transform_indices = @transform_0, window_bounds = array<i64: 512, 128>}, {pipeline_mode = #tpu.pipeline_mode<synchronous>, transform_indices = @transform_1, window_bounds = array<i64: 128, 128>}, {pipeline_mode = #tpu.pipeline_mode<synchronous>, transform_indices = @transform_2, window_bounds = array<i64: 128, 128>}, {transform_indices = @transform_3, window_bounds = array<i64: 512, 128>}, {transform_indices = @transform_4, window_bounds = array<i64: 512, 128>}, {transform_indices = @transform_5, window_bounds = array<i64: 8, 128>}, {transform_indices = @transform_6, window_bounds = array<i64: 8, 128>}]} {
    %c0 = arith.constant 0 : index
    %c0_0 = arith.constant 0 : index
    %0 = vector.load %arg1[%c0, %c0_0] : memref<512x128xbf16, #tpu.memory_space<vmem>>, vector<512x128xbf16>
    %c0_1 = arith.constant 0 : index
    %c0_2 = arith.constant 0 : index
    %1 = vector.load %arg2[%c0_1, %c0_2] : memref<128x128xbf16, #tpu.memory_space<vmem>>, vector<128x128xbf16>
    %cst = arith.constant dense<0.000000e+00> : vector<512x128xf32>
    %2 = tpu.matmul %0, %1, %cst {dimension_numbers = #tpu.dot_dimension_numbers<[1], [0], [0], [1], [0, 0, 1, 1], [], []>} : vector<512x128xbf16>, vector<128x128xbf16>, vector<512x128xf32> -> vector<512x128xf32>
    %cst_3 = arith.constant dense<0.000000e+00> : vector<128xf32>
    %3 = vector.multi_reduction <add>, %2, %cst_3 [0] : vector<512x128xf32> to vector<128xf32>
    %4 = vector.shape_cast %3 : vector<128xf32> to vector<1x128xf32>
    %5 = arith.mulf %2, %2 : vector<512x128xf32>
    %cst_4 = arith.constant dense<0.000000e+00> : vector<128xf32>
    %6 = vector.multi_reduction <add>, %5, %cst_4 [0] : vector<512x128xf32> to vector<128xf32>
    %7 = vector.shape_cast %6 : vector<128xf32> to vector<1x128xf32>
    %cst_5 = arith.constant 0.000000e+00 : f32
    %8 = vector.broadcast %cst_5 : f32 to vector<6x128xf32>
    %9 = tpu.concatenate %4, %7, %8 in 0 : vector<1x128xf32>, vector<1x128xf32>, vector<6x128xf32> -> vector<8x128xf32>
    %c0_6 = arith.constant 0 : index
    %c0_7 = arith.constant 0 : index
    %10 = vector.load %arg6[%c0_6, %c0_7] : memref<8x128xf32, #tpu.memory_space<vmem>>, vector<8x128xf32>
    tpu.vector_store %arg6[%c0_6, %c0_7], %9 {strides = array<i32>} : memref<8x128xf32, #tpu.memory_space<vmem>>, vector<8x128xf32>,
    %11 = arith.truncf %2 : vector<512x128xf32> to vector<512x128xbf16>
    %c0_8 = arith.constant 0 : index
    %c0_9 = arith.constant 0 : index
    %12 = vector.load %arg4[%c0_8, %c0_9] : memref<512x128xbf16, #tpu.memory_space<vmem>>, vector<512x128xbf16>
    tpu.vector_store %arg4[%c0_8, %c0_9], %11 {strides = array<i32>} : memref<512x128xbf16, #tpu.memory_space<vmem>>, vector<512x128xbf16>,
    %c0_10 = arith.constant 0 : index
    %c0_11 = arith.constant 0 : index
    %13 = vector.load %arg3[%c0_10, %c0_11] : memref<128x128xbf16, #tpu.memory_space<vmem>>, vector<128x128xbf16>
    %cst_12 = arith.constant dense<0.000000e+00> : vector<512x128xf32>
    %14 = tpu.matmul %0, %13, %cst_12 {dimension_numbers = #tpu.dot_dimension_numbers<[1], [0], [0], [1], [0, 0, 1, 1], [], []>} : vector<512x128xbf16>, vector<128x128xbf16>, vector<512x128xf32> -> vector<512x128xf32>
    %cst_13 = arith.constant dense<0.000000e+00> : vector<128xf32>
    %15 = vector.multi_reduction <add>, %14, %cst_13 [0] : vector<512x128xf32> to vector<128xf32>
    %16 = vector.shape_cast %15 : vector<128xf32> to vector<1x128xf32>
    %17 = arith.mulf %14, %14 : vector<512x128xf32>
    %cst_14 = arith.constant dense<0.000000e+00> : vector<128xf32>
    %18 = vector.multi_reduction <add>, %17, %cst_14 [0] : vector<512x128xf32> to vector<128xf32>
    %19 = vector.shape_cast %18 : vector<128xf32> to vector<1x128xf32>
    %cst_15 = arith.constant 0.000000e+00 : f32
    %20 = vector.broadcast %cst_15 : f32 to vector<6x128xf32>
    %21 = tpu.concatenate %16, %19, %20 in 0 : vector<1x128xf32>, vector<1x128xf32>, vector<6x128xf32> -> vector<8x128xf32>
    %c0_16 = arith.constant 0 : index
    %c0_17 = arith.constant 0 : index
    %22 = vector.load %arg7[%c0_16, %c0_17] : memref<8x128xf32, #tpu.memory_space<vmem>>, vector<8x128xf32>
    tpu.vector_store %arg7[%c0_16, %c0_17], %21 {strides = array<i32>} : memref<8x128xf32, #tpu.memory_space<vmem>>, vector<8x128xf32>,
    %23 = arith.truncf %14 : vector<512x128xf32> to vector<512x128xbf16>
    %c0_18 = arith.constant 0 : index
    %c0_19 = arith.constant 0 : index
    %24 = vector.load %arg5[%c0_18, %c0_19] : memref<512x128xbf16, #tpu.memory_space<vmem>>, vector<512x128xbf16>
    tpu.vector_store %arg5[%c0_18, %c0_19], %23 {strides = array<i32>} : memref<512x128xbf16, #tpu.memory_space<vmem>>, vector<512x128xbf16>,
    return
  }
  func.func @transform_0(%arg0: i32) -> (i32, i32) {
    %c0_i32 = arith.constant 0 : i32
    %c0_i32_0 = arith.constant 0 : i32
    return %arg0, %c0_i32 : i32, i32
  }
  func.func @transform_1(%arg0: i32) -> (i32, i32) {
    %c0_i32 = arith.constant 0 : i32
    %c0_i32_0 = arith.constant 0 : i32
    %c0_i32_1 = arith.constant 0 : i32
    return %c0_i32, %c0_i32_0 : i32, i32
  }
  func.func @transform_2(%arg0: i32) -> (i32, i32) {
    %c0_i32 = arith.constant 0 : i32
    %c0_i32_0 = arith.constant 0 : i32
    %c0_i32_1 = arith.constant 0 : i32
    return %c0_i32, %c0_i32_0 : i32, i32
  }
  func.func @transform_3(%arg0: i32) -> (i32, i32) {
    %c0_i32 = arith.constant 0 : i32
    %c0_i32_0 = arith.constant 0 : i32
    return %arg0, %c0_i32 : i32, i32
  }
  func.func @transform_4(%arg0: i32) -> (i32, i32) {
    %c0_i32 = arith.constant 0 : i32
    %c0_i32_0 = arith.constant 0 : i32
    return %arg0, %c0_i32 : i32, i32
  }
  func.func @transform_5(%arg0: i32) -> (i32, i32) {
    %c0_i32 = arith.constant 0 : i32
    %c0_i32_0 = arith.constant 0 : i32
    return %arg0, %c0_i32 : i32, i32
  }
  func.func @transform_6(%arg0: i32) -> (i32, i32) {
    %c0_i32 = arith.constant 0 : i32
    %c0_i32_0 = arith.constant 0 : i32
    return %arg0, %c0_i32 : i32, i32
  }
}

</mosaic_0001>

<bundles_post_ra>
// kernel: tpu_custom_call.1
= control target key start
LH: loop header
LB: loop body
LE: loop exit
PB: predicated region body
PF: predicated region fallthrough
CT: control target
= control target key end

     0   :  { %12 = vsyncpa [#allocation3], 0  ;;  %s3456_s0 = inlined_call_operand.hbm [shape: bf16[512,128], index: 0, kind: input, shape index: {}]   ;;  %s3457_s1 = inlined_call_operand.hbm [shape: bf16[128,128], index: 1, kind: input, shape index: {}]   ;;  %s3458_s2 = inlined_call_operand.hbm [shape: bf16[128,128], index: 2, kind: input, shape index: {}]   ;;  %s3459_s3 = inlined_call_operand.hbm [shape: bf16[512,128], index: 3, kind: output, shape index: {0}]   ;;  %s3460_s4 = inlined_call_operand.hbm [shape: bf16[512,128], index: 4, kind: output, shape index: {1}]   ;;  %s3461_s5 = inlined_call_operand.hbm [shape: f32[8,128], index: 5, kind: output, shape index: {2}]   ;;  %s3462_s6 = inlined_call_operand.hbm [shape: f32[8,128], index: 6, kind: output, shape index: {3}]  }
   0x1   :  { %13 = vsyncpa [#allocation6], 0 }
   0x2   :  { %14 = vsyncpa [#allocation4], 0 }
   0x3   :  { %15 = vsyncpa [#allocation10], 0 }
   0x4   :  { %16 = vsyncpa [#allocation13], 0  ;;  %s3285_s21 = smov [#allocation5]   ;;  %s3286_s23 = smov [#allocation2]  }
   0x5   :  { %s34_s22 = sshll.u32 %s3285_s21, 4  ;;  %s22_s24 = sshll.u32 %s3286_s23, 4  ;;  %s35_s22 = int_to_ptr.vmem [resolvable:$true] %s34_s22  ;;  %s3329_s24 = int_to_ptr.vmem [resolvable:$true] %s22_s24 }
   0x6   :  { %s3121_s27 = scalar_lea.hbm %s3457_s1, 1024 }
   0x7   :  { %p3122_p0 = scmp.ne.s32.totalorder %s3457_s1, %s3121_s27  ;;  %p3125_p1 = scmp.lt.u32.totalorder %s3121_s27, %s3457_s1 }
   0x9   :  { %p3127_p2 = pnand %p3125_p1, %p3122_p0 }
   0xb   :  { %3130 = shalt.err (!%p3127_p2)
}
   0xc   :  { %s3131_s8 = scalar_lea.vmem %s35_s22, 1024  ;;  %p3136_p4 = scmp.lt.s32.totalorder %s35_s22, %s35_s22 }
   0xd   :  { %p3132_p3 = scmp.ne.s32.totalorder %s35_s22, %s3131_s8  ;;  %p3137_p5 = scmp.lt.s32.totalorder %s3131_s8, %s3131_s8 }
   0xf   :  { %p3138_p6 = por %p3137_p5, %p3136_p4 }
  0x11   :  { %p3139_p7 = pnand %p3138_p6, %p3132_p3 }
  0x13   :  { %3142 = shalt.err (!%p3139_p7)
}
  0x14   :  { %s3287_s9 = smov 64   ;;  %s3288_s10 = smov 4  }
  0x15   :  { %40 = dma.hbm_to_vmem [thread:$0]  %s3457_s1, 1024, %s35_s22, [#allocation6], %s3287_s9, %s3287_s9, %s3288_s10  }
  0x16   :  { %s3143_s15 = scalar_lea.hbm %s3456_s0, 4096 }
  0x17   :  { %p3144_p8 = scmp.ne.s32.totalorder %s3456_s0, %s3143_s15  ;;  %p3147_p9 = scmp.lt.u32.totalorder %s3143_s15, %s3456_s0 }
  0x19   :  { %p3149_p10 = pnand %p3147_p9, %p3144_p8 }
  0x1b   :  { %3152 = shalt.err (!%p3149_p10)
}
  0x1c   :  { %s3153_s20 = scalar_lea.vmem %s3329_s24, 4096  ;;  %p3158_p12 = scmp.lt.s32.totalorder %s3329_s24, %s3329_s24 }
  0x1d   :  { %p3154_p11 = scmp.ne.s32.totalorder %s3329_s24, %s3153_s20  ;;  %p3159_p13 = scmp.lt.s32.totalorder %s3153_s20, %s3153_s20 }
  0x1f   :  { %p3160_p0 = por %p3159_p13, %p3158_p12 }
  0x21   :  { %p3161_p1 = pnand %p3160_p0, %p3154_p11 }
  0x23   :  { %3164 = shalt.err (!%p3161_p1)
}
  0x24   :  { %28 = dma.hbm_to_vmem [thread:$0]  %s3456_s0, 4096, %s3329_s24, [#allocation3], %s3287_s9, %s3287_s9, %s3288_s10  }
  0x25   :  { %s3289_s22 = smov [#allocation7]   ;;  %s3165_s27 = scalar_lea.hbm %s3458_s2, 1024 }
  0x26   :  { %s46_s23 = sshll.u32 %s3289_s22, 4  ;;  %p3166_p2 = scmp.ne.s32.totalorder %s3458_s2, %s3165_s27  ;;  %s47_s23 = int_to_ptr.vmem [resolvable:$true] %s46_s23 }
  0x27   :  { %p3169_p3 = scmp.lt.u32.totalorder %s3165_s27, %s3458_s2 }
  0x29   :  { %p3171_p4 = pnand %p3169_p3, %p3166_p2 }
  0x2b   :  { %3174 = shalt.err (!%p3171_p4)
}
  0x2c   :  { %s3175_s8 = scalar_lea.vmem %s47_s23, 1024  ;;  %p3180_p6 = scmp.lt.s32.totalorder %s47_s23, %s47_s23 }
  0x2d   :  { %p3176_p5 = scmp.ne.s32.totalorder %s47_s23, %s3175_s8  ;;  %p3181_p7 = scmp.lt.s32.totalorder %s3175_s8, %s3175_s8 }
  0x2f   :  { %p3182_p8 = por %p3181_p7, %p3180_p6 }
  0x31   :  { %p3183_p9 = pnand %p3182_p8, %p3176_p5 }
  0x33   :  { %3186 = shalt.err (!%p3183_p9)
}
  0x34   :  { %52 = dma.hbm_to_vmem [thread:$0]  %s3458_s2, 1024, %s47_s23, [#allocation6], %s3287_s9, %s3287_s9, %s3288_s10  }
  0x35   :  { %3275 = dma.done.wait [#allocation3], 4096  }
  0x36   :  { %3276 = vsyncadd [#allocation3], 4294963200 }
  0x37   :  { %3277 = dma.done.wait [#allocation6], 2048  }
  0x38   :  { %3278 = vsyncadd [#allocation6], 4294965248  ;;  %v3073_v0 = vld [vmem:[#allocation5] sm:$0xff]   ;;  %v3075_v2 = vld [vmem:[#allocation5 + $0x8] sm:$0xff]   ;;  %s3290_s2 = smov [#allocation8]   ;;  %s3291_s12 = smov [#allocation9]  }
  0x39   :  { %v3074_v1 = vld [vmem:[#allocation7] sm:$0xff]   ;;  %2904 = vmatprep.subr.bf16.mxu0 %v3073_v0  ;;  %v3076_v3 = vld [vmem:[#allocation7 + $0x8] sm:$0xff]   ;;  %v3077_v4 = vld [vmem:[#allocation5 + $0x10] sm:$0xff]   ;;  %s2082_s11 = sshll.u32 %s3290_s2, 4  ;;  %s2094_s13 = sshll.u32 %s3291_s12, 4  ;;  %s3381_s11 = int_to_ptr.vmem [resolvable:$true] %s2082_s11  ;;  %s3383_s13 = int_to_ptr.vmem [resolvable:$true] %s2094_s13 }
  0x3a   :  { %2984 = vmatprep.subr.bf16.mxu1 %v3074_v1  ;;  %2905 = vmatpush3.bf16.msra.mxu0 %v3073_v0  ;;  %v3078_v5 = vld [vmem:[#allocation7 + $0x10] sm:$0xff]   ;;  %v3079_v6 = vld [vmem:[#allocation5 + $0x18] sm:$0xff]   ;;  %v3081_v8 = vld [vmem:[#allocation5 + $0x20] sm:$0xff]   ;;  %s3187_s14 = scalar_lea.vmem %s3381_s11, 4096  ;;  %p3192_p11 = scmp.lt.s32.totalorder %s3381_s11, %s3381_s11 }
  0x3b   :  { %2985 = vmatpush3.bf16.msra.mxu1 %v3074_v1  ;;  %2906 = vmatprep.subr.bf16.mxu0 %v3075_v2  ;;  %v3080_v7 = vld [vmem:[#allocation7 + $0x18] sm:$0xff]   ;;  %v3082_v9 = vld [vmem:[#allocation7 + $0x20] sm:$0xff]   ;;  %v3083_v10 = vld [vmem:[#allocation5 + $0x28] sm:$0xff]   ;;  %p3188_p10 = scmp.ne.s32.totalorder %s3381_s11, %s3187_s14  ;;  %p3193_p12 = scmp.lt.s32.totalorder %s3187_s14, %s3187_s14 }
  0x3c   :  { %2986 = vmatprep.subr.bf16.mxu1 %v3076_v3  ;;  %v3089_v11 = vld [vmem:[#allocation2] sm:$0xff]   ;;  %v3084_v12 = vld [vmem:[#allocation7 + $0x28] sm:$0xff]   ;;  %v3085_v13 = vld [vmem:[#allocation5 + $0x30] sm:$0xff]  }
  0x3d   :  { %2920 = vmatprep.mubr.bf16.mxu0 %v3089_v11  ;;  %3000 = vmatprep.mubr.bf16.mxu1 %v3089_v11  ;;  %v3086_v14 = vld [vmem:[#allocation7 + $0x30] sm:$0xff]   ;;  %v3087_v15 = vld [vmem:[#allocation5 + $0x38] sm:$0xff]   ;;  %v3090_v17 = vld [vmem:[#allocation2 + $0x8] sm:$0xff]   ;;  %p3194_p13 = por %p3193_p12, %p3192_p11 }
  0x3e   :  { %2907 = vmatpush3.bf16.msra.mxu0 %v3075_v2  ;;  %v3088_v16 = vld [vmem:[#allocation7 + $0x38] sm:$0xff]   ;;  %v3091_v18 = vld [vmem:[#allocation2 + $0x10] sm:$0xff]   ;;  %v3093_v20 = vld [vmem:[#allocation2 + $0x20] sm:$0xff]  }
  0x3f   :  { %2987 = vmatpush3.bf16.msra.mxu1 %v3076_v3  ;;  %2908 = vmatprep.subr.bf16.mxu0 %v3077_v4  ;;  %v3092_v19 = vld [vmem:[#allocation2 + $0x18] sm:$0xff]   ;;  %v3094_v21 = vld [vmem:[#allocation2 + $0x28] sm:$0xff]   ;;  %v3095_v22 = vld [vmem:[#allocation2 + $0x30] sm:$0xff]   ;;  %p3195_p0 = pnand %p3194_p13, %p3188_p10 }
  0x40   :  { %2988 = vmatprep.subr.bf16.mxu1 %v3078_v5  ;;  %v3096_v23 = vld [vmem:[#allocation2 + $0x38] sm:$0xff]   ;;  %v3097_v24 = vld [vmem:[#allocation2 + $0x40] sm:$0xff]   ;;  %v3098_v25 = vld [vmem:[#allocation2 + $0x48] sm:$0xff]  }
  0x41   :  { %v3099_v26 = vld [vmem:[#allocation2 + $0x50] sm:$0xff]   ;;  %v3100_v27 = vld [vmem:[#allocation2 + $0x58] sm:$0xff]   ;;  %v3101_v28 = vld [vmem:[#allocation2 + $0x60] sm:$0xff]  }
  0x42   :  { %2909 = vmatpush3.bf16.msra.mxu0 %v3077_v4  ;;  %v3102_v29 = vld [vmem:[#allocation2 + $0x68] sm:$0xff]   ;;  %v3103_v30 = vld [vmem:[#allocation2 + $0x70] sm:$0xff]   ;;  %v3104_v31 = vld [vmem:[#allocation2 + $0x78] sm:$0xff]  }
  0x43   :  { %2989 = vmatpush3.bf16.msra.mxu1 %v3078_v5  ;;  %2910 = vmatprep.subr.bf16.mxu0 %v3079_v6  ;;  %v3105_v32 = vld [vmem:[#allocation2 + $0x80] sm:$0xff]   ;;  %v3106_v33 = vld [vmem:[#allocation2 + $0x88] sm:$0xff]   ;;  %v3107_v34 = vld [vmem:[#allocation2 + $0x90] sm:$0xff]  }
  0x44   :  { %2990 = vmatprep.subr.bf16.mxu1 %v3080_v7  ;;  %v3108_v35 = vld [vmem:[#allocation2 + $0x98] sm:$0xff]   ;;  %v3109_v36 = vld [vmem:[#allocation2 + $0xa0] sm:$0xff]   ;;  %v3110_v37 = vld [vmem:[#allocation2 + $0xa8] sm:$0xff]  }
  0x45   :  { %v3111_v38 = vld [vmem:[#allocation2 + $0xb0] sm:$0xff]   ;;  %v3112_v39 = vld [vmem:[#allocation2 + $0xb8] sm:$0xff]   ;;  %v3113_v40 = vld [vmem:[#allocation2 + $0xc0] sm:$0xff]  }
  0x46   :  { %2911 = vmatpush3.bf16.msra.mxu0 %v3079_v6  ;;  %v3114_v41 = vld [vmem:[#allocation2 + $0xc8] sm:$0xff]   ;;  %v3115_v42 = vld [vmem:[#allocation2 + $0xd0] sm:$0xff]   ;;  %v3116_v43 = vld [vmem:[#allocation2 + $0xd8] sm:$0xff]  }
  0x47   :  { %2991 = vmatpush3.bf16.msra.mxu1 %v3080_v7  ;;  %2912 = vmatprep.subr.bf16.mxu0 %v3081_v8  ;;  %v3117_v44 = vld [vmem:[#allocation2 + $0xe0] sm:$0xff]   ;;  %v3118_v45 = vld [vmem:[#allocation2 + $0xe8] sm:$0xff]   ;;  %v3119_v46 = vld [vmem:[#allocation2 + $0xf0] sm:$0xff]  }
  0x48   :  { %2992 = vmatprep.subr.bf16.mxu1 %v3082_v9  ;;  %v3120_v47 = vld [vmem:[#allocation2 + $0xf8] sm:$0xff]  }
  0x4a   :  { %2913 = vmatpush3.bf16.msra.mxu0 %v3081_v8 }
  0x4b   :  { %2993 = vmatpush3.bf16.msra.mxu1 %v3082_v9  ;;  %2914 = vmatprep.subr.bf16.mxu0 %v3083_v10 }
  0x4c   :  { %2994 = vmatprep.subr.bf16.mxu1 %v3084_v12 }
  0x4e   :  { %2915 = vmatpush3.bf16.msra.mxu0 %v3083_v10 }
  0x4f   :  { %2995 = vmatpush3.bf16.msra.mxu1 %v3084_v12  ;;  %2916 = vmatprep.subr.bf16.mxu0 %v3085_v13 }
  0x50   :  { %2996 = vmatprep.subr.bf16.mxu1 %v3086_v14 }
  0x52   :  { %2917 = vmatpush3.bf16.msra.mxu0 %v3085_v13 }
  0x53   :  { %2997 = vmatpush3.bf16.msra.mxu1 %v3086_v14  ;;  %2918 = vmatprep.subr.bf16.mxu0 %v3087_v15 }
  0x54   :  { %2998 = vmatprep.subr.bf16.mxu1 %v3088_v16 }
  0x56   :  { %2919 = vmatpush3.bf16.msra.mxu0 %v3087_v15 }
  0x57   :  { %2999 = vmatpush3.bf16.msra.mxu1 %v3088_v16 }
  0x59   :  { %2921 = vmatmul.mubr.bf16.vlgmr.msra.gmra.mrb[0].mxu0 %v3090_v17 }
  0x5a   :  { %3001 = vmatmul.mubr.bf16.vlgmr.msra.gmra.mrb[0].mxu1 %v3090_v17  ;;  %2924 = vmatprep.mubr.bf16.mxu0 %v3091_v18 }
  0x5b   :  { %3004 = vmatprep.mubr.bf16.mxu1 %v3091_v18 }
  0x61   :  { %2925 = vmatmul.mubr.bf16.gmra.mrb[4].mxu0 %v3092_v19 }
  0x62   :  { %3005 = vmatmul.mubr.bf16.gmra.mrb[4].mxu1 %v3092_v19  ;;  %2928 = vmatprep.mubr.bf16.mxu0 %v3093_v20 }
  0x63   :  { %3008 = vmatprep.mubr.bf16.mxu1 %v3093_v20 }
  0x69   :  { %2929 = vmatmul.mubr.bf16.gmra.mrb[8].mxu0 %v3094_v21 }
  0x6a   :  { %3009 = vmatmul.mubr.bf16.gmra.mrb[8].mxu1 %v3094_v21  ;;  %2932 = vmatprep.mubr.bf16.mxu0 %v3095_v22 }
  0x6b   :  { %3012 = vmatprep.mubr.bf16.mxu1 %v3095_v22 }
  0x71   :  { %2933 = vmatmul.mubr.bf16.gmra.mrb[12].mxu0 %v3096_v23 }
  0x72   :  { %3013 = vmatmul.mubr.bf16.gmra.mrb[12].mxu1 %v3096_v23  ;;  %2936 = vmatprep.mubr.bf16.mxu0 %v3097_v24 }
  0x73   :  { %3016 = vmatprep.mubr.bf16.mxu1 %v3097_v24 }
  0x79   :  { %2937 = vmatmul.mubr.bf16.gmra.mrb[16].mxu0 %v3098_v25 }
  0x7a   :  { %3017 = vmatmul.mubr.bf16.gmra.mrb[16].mxu1 %v3098_v25  ;;  %2940 = vmatprep.mubr.bf16.mxu0 %v3099_v26 }
  0x7b   :  { %3020 = vmatprep.mubr.bf16.mxu1 %v3099_v26 }
  0x81   :  { %2941 = vmatmul.mubr.bf16.gmra.mrb[20].mxu0 %v3100_v27 }
  0x82   :  { %3021 = vmatmul.mubr.bf16.gmra.mrb[20].mxu1 %v3100_v27  ;;  %2944 = vmatprep.mubr.bf16.mxu0 %v3101_v28 }
  0x83   :  { %3024 = vmatprep.mubr.bf16.mxu1 %v3101_v28 }
  0x89   :  { %2945 = vmatmul.mubr.bf16.gmra.mrb[24].mxu0 %v3102_v29 }
  0x8a   :  { %3025 = vmatmul.mubr.bf16.gmra.mrb[24].mxu1 %v3102_v29  ;;  %2948 = vmatprep.mubr.bf16.mxu0 %v3103_v30 }
  0x8b   :  { %3028 = vmatprep.mubr.bf16.mxu1 %v3103_v30 }
  0x91   :  { %2949 = vmatmul.mubr.bf16.gmra.mrb[28].mxu0 %v3104_v31 }
  0x92   :  { %3029 = vmatmul.mubr.bf16.gmra.mrb[28].mxu1 %v3104_v31  ;;  %2952 = vmatprep.mubr.bf16.mxu0 %v3105_v32 }
  0x93   :  { %3032 = vmatprep.mubr.bf16.mxu1 %v3105_v32 }
  0x99   :  { %2953 = vmatmul.mubr.bf16.gmra.mrb[32].mxu0 %v3106_v33 }
  0x9a   :  { %3033 = vmatmul.mubr.bf16.gmra.mrb[32].mxu1 %v3106_v33  ;;  %2956 = vmatprep.mubr.bf16.mxu0 %v3107_v34 }
  0x9b   :  { %3036 = vmatprep.mubr.bf16.mxu1 %v3107_v34 }
  0xa1   :  { %2957 = vmatmul.mubr.bf16.gmra.mrb[36].mxu0 %v3108_v35 }
  0xa2   :  { %3037 = vmatmul.mubr.bf16.gmra.mrb[36].mxu1 %v3108_v35  ;;  %2960 = vmatprep.mubr.bf16.mxu0 %v3109_v36 }
  0xa3   :  { %3040 = vmatprep.mubr.bf16.mxu1 %v3109_v36 }
  0xa9   :  { %2961 = vmatmul.mubr.bf16.gmra.mrb[40].mxu0 %v3110_v37 }
  0xaa   :  { %3041 = vmatmul.mubr.bf16.gmra.mrb[40].mxu1 %v3110_v37  ;;  %2964 = vmatprep.mubr.bf16.mxu0 %v3111_v38 }
  0xab   :  { %3044 = vmatprep.mubr.bf16.mxu1 %v3111_v38 }
  0xb1   :  { %2965 = vmatmul.mubr.bf16.gmra.mrb[44].mxu0 %v3112_v39 }
  0xb2   :  { %3045 = vmatmul.mubr.bf16.gmra.mrb[44].mxu1 %v3112_v39  ;;  %2968 = vmatprep.mubr.bf16.mxu0 %v3113_v40 }
  0xb3   :  { %3048 = vmatprep.mubr.bf16.mxu1 %v3113_v40 }
  0xb9   :  { %2969 = vmatmul.mubr.bf16.gmra.mrb[48].mxu0 %v3114_v41 }
  0xba   :  { %3049 = vmatmul.mubr.bf16.gmra.mrb[48].mxu1 %v3114_v41  ;;  %2972 = vmatprep.mubr.bf16.mxu0 %v3115_v42 }
  0xbb   :  { %3052 = vmatprep.mubr.bf16.mxu1 %v3115_v42 }
  0xc1   :  { %2973 = vmatmul.mubr.bf16.gmra.mrb[52].mxu0 %v3116_v43 }
  0xc2   :  { %3053 = vmatmul.mubr.bf16.gmra.mrb[52].mxu1 %v3116_v43  ;;  %2976 = vmatprep.mubr.bf16.mxu0 %v3117_v44 }
  0xc3   :  { %3056 = vmatprep.mubr.bf16.mxu1 %v3117_v44 }
  0xc9   :  { %2977 = vmatmul.mubr.bf16.gmra.mrb[56].mxu0 %v3118_v45 }
  0xca   :  { %3057 = vmatmul.mubr.bf16.gmra.mrb[56].mxu1 %v3118_v45  ;;  %2980 = vmatprep.mubr.bf16.mxu0 %v3119_v46 }
  0xcb   :  { %3060 = vmatprep.mubr.bf16.mxu1 %v3119_v46 }
  0xd1   :  { %2981 = vmatmul.mubr.bf16.gmra.mrb[60].mxu0 %v3120_v47 }
  0xd2   :  { %3061 = vmatmul.mubr.bf16.gmra.mrb[60].mxu1 %v3120_v47 }
 0x12c   :  { %v2922_v48 = vpop.f32.mrb[0].mxu0 }
 0x12d   :  { %v3002_v49 = vpop.f32.mrb[0].mxu1  ;;  %v417_v50 = vpop.f32.mrb[1].mxu0  ;;  %v743_v2 = vmul.f32 %v2922_v48, %v2922_v48 }
 0x12e   :  { %v1297_v51 = vpop.f32.mrb[1].mxu1  ;;  %v2923_v52 = vpop.f32.mrb[2].mxu0  ;;  %v741_v53 = vmul.f32 %v417_v50, %v417_v50  ;;  %v1623_v5 = vmul.f32 %v3002_v49, %v3002_v49 }
 0x12f   :  { %v2450_v54 = vpack.c.bf16 %v2923_v52, %v2922_v48  ;;  %v3003_v55 = vpop.f32.mrb[2].mxu1  ;;  %v420_v56 = vpop.f32.mrb[3].mxu0  ;;  %v1621_v57 = vmul.f32 %v1297_v51, %v1297_v51  ;;  %v744_v8 = vmul.f32 %v2923_v52, %v2923_v52 }
 0x130   :  { %v2610_v58 = vpack.c.bf16 %v3003_v55, %v3002_v49  ;;  %v672_v59 = vadd.f32 %v420_v56, %v417_v50  ;;  %v742_v60 = vmul.f32 %v420_v56, %v420_v56  ;;  %v1300_v61 = vpop.f32.mrb[3].mxu1  ;;  %v2445_v62 = vpack.c.bf16 %v420_v56, %v417_v50 }
 0x131   :  { %2762 = vst [vmem:[#allocation8 + $0x8] sm:$0xff] %v2450_v54   ;;  %v1552_v63 = vadd.f32 %v1300_v61, %v1297_v51  ;;  %v1622_v0 = vmul.f32 %v1300_v61, %v1300_v61  ;;  %v2605_v1 = vpack.c.bf16 %v1300_v61, %v1297_v51  ;;  %v1624_v12 = vmul.f32 %v3003_v55, %v3003_v55 }
 0x132   :  { %2793 = vst [vmem:[#allocation9 + $0x8] sm:$0xff] %v2610_v58   ;;  %v673_v3 = vadd.f32 %v2922_v48, %v672_v59  ;;  %v805_v4 = vadd.f32 %v742_v60, %v741_v53  ;;  %2446 = vst [vmem:[#allocation8] sm:$0xff] %v2445_v62  }
 0x133   :  { %v1553_v6 = vadd.f32 %v3002_v49, %v1552_v63  ;;  %v1685_v7 = vadd.f32 %v1622_v0, %v1621_v57  ;;  %2606 = vst [vmem:[#allocation9] sm:$0xff] %v2605_v1  }
 0x134   :  { %v806_v9 = vadd.f32 %v805_v4, %v743_v2  ;;  %v2926_v10 = vpop.f32.mrb[4].mxu0  ;;  %v674_v11 = vadd.f32 %v2923_v52, %v673_v3 }
 0x135   :  { %v1686_v13 = vadd.f32 %v1685_v7, %v1623_v5  ;;  %v3006_v14 = vpop.f32.mrb[4].mxu1  ;;  %v433_v15 = vpop.f32.mrb[5].mxu0  ;;  %v1554_v16 = vadd.f32 %v3003_v55, %v1553_v6  ;;  %v747_v38 = vmul.f32 %v2926_v10, %v2926_v10 }
 0x136   :  { %v675_v17 = vadd.f32 %v674_v11, %v433_v15  ;;  %v745_v18 = vmul.f32 %v433_v15, %v433_v15  ;;  %v807_v19 = vadd.f32 %v806_v9, %v744_v8  ;;  %v1313_v20 = vpop.f32.mrb[5].mxu1  ;;  %v2927_v21 = vpop.f32.mrb[6].mxu0  ;;  %v1627_v41 = vmul.f32 %v3006_v14, %v3006_v14 }
 0x137   :  { %v1555_v22 = vadd.f32 %v1554_v16, %v1313_v20  ;;  %v1625_v23 = vmul.f32 %v1313_v20, %v1313_v20  ;;  %v1687_v24 = vadd.f32 %v1686_v13, %v1624_v12  ;;  %v3007_v25 = vpop.f32.mrb[6].mxu1  ;;  %v436_v26 = vpop.f32.mrb[7].mxu0  ;;  %v2460_v28 = vpack.c.bf16 %v2927_v21, %v2926_v10 }
 0x138   :  { %v808_v27 = vadd.f32 %v807_v19, %v745_v18  ;;  %v2620_v29 = vpack.c.bf16 %v3007_v25, %v3006_v14  ;;  %v1316_v30 = vpop.f32.mrb[7].mxu1  ;;  %v676_v32 = vadd.f32 %v675_v17, %v436_v26  ;;  %v746_v33 = vmul.f32 %v436_v26, %v436_v26 }
 0x139   :  { %v1688_v31 = vadd.f32 %v1687_v24, %v1625_v23  ;;  %v2455_v34 = vpack.c.bf16 %v436_v26, %v433_v15  ;;  %2764 = vst [vmem:[#allocation8 + $0x18] sm:$0xff] %v2460_v28   ;;  %v1556_v35 = vadd.f32 %v1555_v22, %v1316_v30  ;;  %v1626_v36 = vmul.f32 %v1316_v30, %v1316_v30 }
 0x13a   :  { %2795 = vst [vmem:[#allocation9 + $0x18] sm:$0xff] %v2620_v29   ;;  %v2615_v37 = vpack.c.bf16 %v1316_v30, %v1313_v20  ;;  %v677_v39 = vadd.f32 %v2926_v10, %v676_v32  ;;  %v809_v40 = vadd.f32 %v808_v27, %v746_v33  ;;  %v748_v45 = vmul.f32 %v2927_v21, %v2927_v21 }
 0x13b   :  { %2763 = vst [vmem:[#allocation8 + $0x10] sm:$0xff] %v2455_v34   ;;  %v1557_v42 = vadd.f32 %v3006_v14, %v1556_v35  ;;  %v1689_v43 = vadd.f32 %v1688_v31, %v1626_v36  ;;  %v1628_v50 = vmul.f32 %v3007_v25, %v3007_v25 }
 0x13c   :  { %2794 = vst [vmem:[#allocation9 + $0x10] sm:$0xff] %v2615_v37   ;;  %v2930_v44 = vpop.f32.mrb[8].mxu0  ;;  %v810_v46 = vadd.f32 %v809_v40, %v747_v38  ;;  %v678_v49 = vadd.f32 %v2927_v21, %v677_v39 }
 0x13d   :  { %v3010_v47 = vpop.f32.mrb[8].mxu1  ;;  %v449_v48 = vpop.f32.mrb[9].mxu0  ;;  %v1690_v51 = vadd.f32 %v1689_v43, %v1627_v41  ;;  %v1558_v54 = vadd.f32 %v3007_v25, %v1557_v42  ;;  %v751_v9 = vmul.f32 %v2930_v44, %v2930_v44 }
 0x13e   :  { %v749_v52 = vmul.f32 %v449_v48, %v449_v48  ;;  %v1329_v53 = vpop.f32.mrb[9].mxu1  ;;  %v2931_v55 = vpop.f32.mrb[10].mxu0  ;;  %v679_v56 = vadd.f32 %v678_v49, %v449_v48  ;;  %v811_v57 = vadd.f32 %v810_v46, %v748_v45  ;;  %v1631_v13 = vmul.f32 %v3010_v47, %v3010_v47 }
 0x13f   :  { %v1629_v58 = vmul.f32 %v1329_v53, %v1329_v53  ;;  %v3011_v59 = vpop.f32.mrb[10].mxu1  ;;  %v452_v60 = vpop.f32.mrb[11].mxu0  ;;  %v1559_v61 = vadd.f32 %v1558_v54, %v1329_v53  ;;  %v1691_v62 = vadd.f32 %v1690_v51, %v1628_v50  ;;  %v2470_v63 = vpack.c.bf16 %v2931_v55, %v2930_v44 }
 0x140   :  { %v1332_v0 = vpop.f32.mrb[11].mxu1  ;;  %v812_v1 = vadd.f32 %v811_v57, %v749_v52  ;;  %v2630_v2 = vpack.c.bf16 %v3011_v59, %v3010_v47  ;;  %v680_v3 = vadd.f32 %v679_v56, %v452_v60  ;;  %v750_v4 = vmul.f32 %v452_v60, %v452_v60 }
 0x141   :  { %v1692_v5 = vadd.f32 %v1691_v62, %v1629_v58  ;;  %2766 = vst [vmem:[#allocation8 + $0x28] sm:$0xff] %v2470_v63   ;;  %v2465_v6 = vpack.c.bf16 %v452_v60, %v449_v48  ;;  %v1560_v7 = vadd.f32 %v1559_v61, %v1332_v0  ;;  %v1630_v8 = vmul.f32 %v1332_v0, %v1332_v0 }
 0x142   :  { %2797 = vst [vmem:[#allocation9 + $0x28] sm:$0xff] %v2630_v2   ;;  %v681_v10 = vadd.f32 %v2930_v44, %v680_v3  ;;  %v813_v11 = vadd.f32 %v812_v1, %v750_v4  ;;  %v2625_v12 = vpack.c.bf16 %v1332_v0, %v1329_v53  ;;  %v752_v17 = vmul.f32 %v2931_v55, %v2931_v55 }
 0x143   :  { %2765 = vst [vmem:[#allocation8 + $0x20] sm:$0xff] %v2465_v6   ;;  %v1561_v14 = vadd.f32 %v3010_v47, %v1560_v7  ;;  %v1693_v15 = vadd.f32 %v1692_v5, %v1630_v8  ;;  %v1632_v22 = vmul.f32 %v3011_v59, %v3011_v59 }
 0x144   :  { %v2934_v16 = vpop.f32.mrb[12].mxu0  ;;  %v814_v18 = vadd.f32 %v813_v11, %v751_v9  ;;  %2796 = vst [vmem:[#allocation9 + $0x20] sm:$0xff] %v2625_v12   ;;  %v682_v21 = vadd.f32 %v2931_v55, %v681_v10 }
 0x145   :  { %v3014_v19 = vpop.f32.mrb[12].mxu1  ;;  %v465_v20 = vpop.f32.mrb[13].mxu0  ;;  %v1694_v23 = vadd.f32 %v1693_v15, %v1631_v13  ;;  %v1562_v26 = vadd.f32 %v3011_v59, %v1561_v14  ;;  %v755_v45 = vmul.f32 %v2934_v16, %v2934_v16 }
 0x146   :  { %v753_v24 = vmul.f32 %v465_v20, %v465_v20  ;;  %v1345_v25 = vpop.f32.mrb[13].mxu1  ;;  %v2935_v27 = vpop.f32.mrb[14].mxu0  ;;  %v683_v28 = vadd.f32 %v682_v21, %v465_v20  ;;  %v815_v29 = vadd.f32 %v814_v18, %v752_v17  ;;  %v1635_v49 = vmul.f32 %v3014_v19, %v3014_v19 }
 0x147   :  { %v1633_v30 = vmul.f32 %v1345_v25, %v1345_v25  ;;  %v3015_v31 = vpop.f32.mrb[14].mxu1  ;;  %v468_v32 = vpop.f32.mrb[15].mxu0  ;;  %v1563_v33 = vadd.f32 %v1562_v26, %v1345_v25  ;;  %v1695_v34 = vadd.f32 %v1694_v23, %v1632_v22  ;;  %v2480_v35 = vpack.c.bf16 %v2935_v27, %v2934_v16 }
 0x148   :  { %v1348_v36 = vpop.f32.mrb[15].mxu1  ;;  %v816_v37 = vadd.f32 %v815_v29, %v753_v24  ;;  %v2640_v38 = vpack.c.bf16 %v3015_v31, %v3014_v19  ;;  %v684_v39 = vadd.f32 %v683_v28, %v468_v32  ;;  %v754_v40 = vmul.f32 %v468_v32, %v468_v32 }
 0x149   :  { %v1696_v41 = vadd.f32 %v1695_v34, %v1633_v30  ;;  %2768 = vst [vmem:[#allocation8 + $0x38] sm:$0xff] %v2480_v35   ;;  %v2475_v42 = vpack.c.bf16 %v468_v32, %v465_v20  ;;  %v1564_v43 = vadd.f32 %v1563_v33, %v1348_v36  ;;  %v1634_v44 = vmul.f32 %v1348_v36, %v1348_v36 }
 0x14a   :  { %2799 = vst [vmem:[#allocation9 + $0x38] sm:$0xff] %v2640_v38   ;;  %v685_v46 = vadd.f32 %v2934_v16, %v684_v39  ;;  %v817_v47 = vadd.f32 %v816_v37, %v754_v40  ;;  %v2635_v48 = vpack.c.bf16 %v1348_v36, %v1345_v25  ;;  %v756_v53 = vmul.f32 %v2935_v27, %v2935_v27 }
 0x14b   :  { %2767 = vst [vmem:[#allocation8 + $0x30] sm:$0xff] %v2475_v42   ;;  %v1565_v50 = vadd.f32 %v3014_v19, %v1564_v43  ;;  %v1697_v51 = vadd.f32 %v1696_v41, %v1634_v44  ;;  %v1636_v58 = vmul.f32 %v3015_v31, %v3015_v31 }
 0x14c   :  { %v2938_v52 = vpop.f32.mrb[16].mxu0  ;;  %v818_v54 = vadd.f32 %v817_v47, %v755_v45  ;;  %2798 = vst [vmem:[#allocation9 + $0x30] sm:$0xff] %v2635_v48   ;;  %v686_v57 = vadd.f32 %v2935_v27, %v685_v46 }
 0x14d   :  { %v3018_v55 = vpop.f32.mrb[16].mxu1  ;;  %v481_v56 = vpop.f32.mrb[17].mxu0  ;;  %v1698_v59 = vadd.f32 %v1697_v51, %v1635_v49  ;;  %v1566_v62 = vadd.f32 %v3015_v31, %v1565_v50  ;;  %v759_v17 = vmul.f32 %v2938_v52, %v2938_v52 }
 0x14e   :  { %v757_v60 = vmul.f32 %v481_v56, %v481_v56  ;;  %v1361_v61 = vpop.f32.mrb[17].mxu1  ;;  %v2939_v63 = vpop.f32.mrb[18].mxu0  ;;  %v687_v0 = vadd.f32 %v686_v57, %v481_v56  ;;  %v819_v1 = vadd.f32 %v818_v54, %v756_v53  ;;  %v1639_v21 = vmul.f32 %v3018_v55, %v3018_v55 }
 0x14f   :  { %v1637_v2 = vmul.f32 %v1361_v61, %v1361_v61  ;;  %v3019_v3 = vpop.f32.mrb[18].mxu1  ;;  %v484_v4 = vpop.f32.mrb[19].mxu0  ;;  %v1567_v5 = vadd.f32 %v1566_v62, %v1361_v61  ;;  %v1699_v6 = vadd.f32 %v1698_v59, %v1636_v58  ;;  %v2490_v7 = vpack.c.bf16 %v2939_v63, %v2938_v52 }
 0x150   :  { %v1364_v8 = vpop.f32.mrb[19].mxu1  ;;  %v820_v9 = vadd.f32 %v819_v1, %v757_v60  ;;  %v2650_v10 = vpack.c.bf16 %v3019_v3, %v3018_v55  ;;  %v688_v11 = vadd.f32 %v687_v0, %v484_v4  ;;  %v758_v12 = vmul.f32 %v484_v4, %v484_v4 }
 0x151   :  { %v1700_v13 = vadd.f32 %v1699_v6, %v1637_v2  ;;  %2770 = vst [vmem:[#allocation8 + $0x48] sm:$0xff] %v2490_v7   ;;  %v2485_v14 = vpack.c.bf16 %v484_v4, %v481_v56  ;;  %v1568_v15 = vadd.f32 %v1567_v5, %v1364_v8  ;;  %v1638_v16 = vmul.f32 %v1364_v8, %v1364_v8 }
 0x152   :  { %2801 = vst [vmem:[#allocation9 + $0x48] sm:$0xff] %v2650_v10   ;;  %v689_v18 = vadd.f32 %v2938_v52, %v688_v11  ;;  %v821_v19 = vadd.f32 %v820_v9, %v758_v12  ;;  %v2645_v20 = vpack.c.bf16 %v1364_v8, %v1361_v61  ;;  %v760_v25 = vmul.f32 %v2939_v63, %v2939_v63 }
 0x153   :  { %2769 = vst [vmem:[#allocation8 + $0x40] sm:$0xff] %v2485_v14   ;;  %v1569_v22 = vadd.f32 %v3018_v55, %v1568_v15  ;;  %v1701_v23 = vadd.f32 %v1700_v13, %v1638_v16  ;;  %v1640_v30 = vmul.f32 %v3019_v3, %v3019_v3 }
 0x154   :  { %v2942_v24 = vpop.f32.mrb[20].mxu0  ;;  %v822_v26 = vadd.f32 %v821_v19, %v759_v17  ;;  %2800 = vst [vmem:[#allocation9 + $0x40] sm:$0xff] %v2645_v20   ;;  %v690_v29 = vadd.f32 %v2939_v63, %v689_v18 }
 0x155   :  { %v3022_v27 = vpop.f32.mrb[20].mxu1  ;;  %v497_v28 = vpop.f32.mrb[21].mxu0  ;;  %v1702_v31 = vadd.f32 %v1701_v23, %v1639_v21  ;;  %v1570_v34 = vadd.f32 %v3019_v3, %v1569_v22  ;;  %v763_v53 = vmul.f32 %v2942_v24, %v2942_v24 }
 0x156   :  { %v761_v32 = vmul.f32 %v497_v28, %v497_v28  ;;  %v1377_v33 = vpop.f32.mrb[21].mxu1  ;;  %v2943_v35 = vpop.f32.mrb[22].mxu0  ;;  %v691_v36 = vadd.f32 %v690_v29, %v497_v28  ;;  %v823_v37 = vadd.f32 %v822_v26, %v760_v25  ;;  %v1643_v57 = vmul.f32 %v3022_v27, %v3022_v27 }
 0x157   :  { %v1641_v38 = vmul.f32 %v1377_v33, %v1377_v33  ;;  %v3023_v39 = vpop.f32.mrb[22].mxu1  ;;  %v500_v40 = vpop.f32.mrb[23].mxu0  ;;  %v1571_v41 = vadd.f32 %v1570_v34, %v1377_v33  ;;  %v1703_v42 = vadd.f32 %v1702_v31, %v1640_v30  ;;  %v2500_v43 = vpack.c.bf16 %v2943_v35, %v2942_v24 }
 0x158   :  { %v1380_v44 = vpop.f32.mrb[23].mxu1  ;;  %v824_v45 = vadd.f32 %v823_v37, %v761_v32  ;;  %v2660_v46 = vpack.c.bf16 %v3023_v39, %v3022_v27  ;;  %v692_v47 = vadd.f32 %v691_v36, %v500_v40  ;;  %v762_v48 = vmul.f32 %v500_v40, %v500_v40 }
 0x159   :  { %v1704_v49 = vadd.f32 %v1703_v42, %v1641_v38  ;;  %2772 = vst [vmem:[#allocation8 + $0x58] sm:$0xff] %v2500_v43   ;;  %v2495_v50 = vpack.c.bf16 %v500_v40, %v497_v28  ;;  %v1572_v51 = vadd.f32 %v1571_v41, %v1380_v44  ;;  %v1642_v52 = vmul.f32 %v1380_v44, %v1380_v44 }
 0x15a   :  { %2803 = vst [vmem:[#allocation9 + $0x58] sm:$0xff] %v2660_v46   ;;  %v693_v54 = vadd.f32 %v2942_v24, %v692_v47  ;;  %v825_v55 = vadd.f32 %v824_v45, %v762_v48  ;;  %v2655_v56 = vpack.c.bf16 %v1380_v44, %v1377_v33  ;;  %v764_v61 = vmul.f32 %v2943_v35, %v2943_v35 }
 0x15b   :  { %2771 = vst [vmem:[#allocation8 + $0x50] sm:$0xff] %v2495_v50   ;;  %v1573_v58 = vadd.f32 %v3022_v27, %v1572_v51  ;;  %v1705_v59 = vadd.f32 %v1704_v49, %v1642_v52  ;;  %v1644_v2 = vmul.f32 %v3023_v39, %v3023_v39 }
 0x15c   :  { %v2946_v60 = vpop.f32.mrb[24].mxu0  ;;  %v826_v62 = vadd.f32 %v825_v55, %v763_v53  ;;  %2802 = vst [vmem:[#allocation9 + $0x50] sm:$0xff] %v2655_v56   ;;  %v694_v1 = vadd.f32 %v2943_v35, %v693_v54 }
 0x15d   :  { %v3026_v63 = vpop.f32.mrb[24].mxu1  ;;  %v513_v0 = vpop.f32.mrb[25].mxu0  ;;  %v1706_v3 = vadd.f32 %v1705_v59, %v1643_v57  ;;  %v1574_v6 = vadd.f32 %v3023_v39, %v1573_v58  ;;  %v767_v25 = vmul.f32 %v2946_v60, %v2946_v60 }
 0x15e   :  { %v765_v4 = vmul.f32 %v513_v0, %v513_v0  ;;  %v1393_v5 = vpop.f32.mrb[25].mxu1  ;;  %v2947_v7 = vpop.f32.mrb[26].mxu0  ;;  %v695_v8 = vadd.f32 %v694_v1, %v513_v0  ;;  %v827_v9 = vadd.f32 %v826_v62, %v764_v61  ;;  %v1647_v29 = vmul.f32 %v3026_v63, %v3026_v63 }
 0x15f   :  { %v1645_v10 = vmul.f32 %v1393_v5, %v1393_v5  ;;  %v3027_v11 = vpop.f32.mrb[26].mxu1  ;;  %v516_v12 = vpop.f32.mrb[27].mxu0  ;;  %v1575_v13 = vadd.f32 %v1574_v6, %v1393_v5  ;;  %v1707_v14 = vadd.f32 %v1706_v3, %v1644_v2  ;;  %v2510_v15 = vpack.c.bf16 %v2947_v7, %v2946_v60 }
 0x160   :  { %v1396_v16 = vpop.f32.mrb[27].mxu1  ;;  %v828_v17 = vadd.f32 %v827_v9, %v765_v4  ;;  %v2670_v18 = vpack.c.bf16 %v3027_v11, %v3026_v63  ;;  %v696_v19 = vadd.f32 %v695_v8, %v516_v12  ;;  %v766_v20 = vmul.f32 %v516_v12, %v516_v12 }
 0x161   :  { %v1708_v21 = vadd.f32 %v1707_v14, %v1645_v10  ;;  %2774 = vst [vmem:[#allocation8 + $0x68] sm:$0xff] %v2510_v15   ;;  %v2505_v22 = vpack.c.bf16 %v516_v12, %v513_v0  ;;  %v1576_v23 = vadd.f32 %v1575_v13, %v1396_v16  ;;  %v1646_v24 = vmul.f32 %v1396_v16, %v1396_v16 }
 0x162   :  { %2805 = vst [vmem:[#allocation9 + $0x68] sm:$0xff] %v2670_v18   ;;  %v697_v26 = vadd.f32 %v2946_v60, %v696_v19  ;;  %v829_v27 = vadd.f32 %v828_v17, %v766_v20  ;;  %v2665_v28 = vpack.c.bf16 %v1396_v16, %v1393_v5  ;;  %v768_v33 = vmul.f32 %v2947_v7, %v2947_v7 }
 0x163   :  { %2773 = vst [vmem:[#allocation8 + $0x60] sm:$0xff] %v2505_v22   ;;  %v1577_v30 = vadd.f32 %v3026_v63, %v1576_v23  ;;  %v1709_v31 = vadd.f32 %v1708_v21, %v1646_v24  ;;  %v1648_v38 = vmul.f32 %v3027_v11, %v3027_v11 }
 0x164   :  { %v2950_v32 = vpop.f32.mrb[28].mxu0  ;;  %v830_v34 = vadd.f32 %v829_v27, %v767_v25  ;;  %2804 = vst [vmem:[#allocation9 + $0x60] sm:$0xff] %v2665_v28   ;;  %v698_v37 = vadd.f32 %v2947_v7, %v697_v26 }
 0x165   :  { %v3030_v35 = vpop.f32.mrb[28].mxu1  ;;  %v529_v36 = vpop.f32.mrb[29].mxu0  ;;  %v1710_v39 = vadd.f32 %v1709_v31, %v1647_v29  ;;  %v1578_v42 = vadd.f32 %v3027_v11, %v1577_v30  ;;  %v771_v61 = vmul.f32 %v2950_v32, %v2950_v32 }
 0x166   :  { %v769_v40 = vmul.f32 %v529_v36, %v529_v36  ;;  %v1409_v41 = vpop.f32.mrb[29].mxu1  ;;  %v2951_v43 = vpop.f32.mrb[30].mxu0  ;;  %v699_v44 = vadd.f32 %v698_v37, %v529_v36  ;;  %v831_v45 = vadd.f32 %v830_v34, %v768_v33  ;;  %v1651_v1 = vmul.f32 %v3030_v35, %v3030_v35 }
 0x167   :  { %v1649_v46 = vmul.f32 %v1409_v41, %v1409_v41  ;;  %v3031_v47 = vpop.f32.mrb[30].mxu1  ;;  %v532_v48 = vpop.f32.mrb[31].mxu0  ;;  %v1579_v49 = vadd.f32 %v1578_v42, %v1409_v41  ;;  %v1711_v50 = vadd.f32 %v1710_v39, %v1648_v38  ;;  %v2520_v51 = vpack.c.bf16 %v2951_v43, %v2950_v32 }
 0x168   :  { %v1412_v52 = vpop.f32.mrb[31].mxu1  ;;  %v832_v53 = vadd.f32 %v831_v45, %v769_v40  ;;  %v2680_v54 = vpack.c.bf16 %v3031_v47, %v3030_v35  ;;  %v700_v55 = vadd.f32 %v699_v44, %v532_v48  ;;  %v770_v56 = vmul.f32 %v532_v48, %v532_v48 }
 0x169   :  { %v1712_v57 = vadd.f32 %v1711_v50, %v1649_v46  ;;  %2776 = vst [vmem:[#allocation8 + $0x78] sm:$0xff] %v2520_v51   ;;  %v2515_v58 = vpack.c.bf16 %v532_v48, %v529_v36  ;;  %v1580_v59 = vadd.f32 %v1579_v49, %v1412_v52  ;;  %v1650_v60 = vmul.f32 %v1412_v52, %v1412_v52 }
 0x16a   :  { %2807 = vst [vmem:[#allocation9 + $0x78] sm:$0xff] %v2680_v54   ;;  %v701_v62 = vadd.f32 %v2950_v32, %v700_v55  ;;  %v833_v63 = vadd.f32 %v832_v53, %v770_v56  ;;  %v2675_v0 = vpack.c.bf16 %v1412_v52, %v1409_v41  ;;  %v772_v5 = vmul.f32 %v2951_v43, %v2951_v43 }
 0x16b   :  { %2775 = vst [vmem:[#allocation8 + $0x70] sm:$0xff] %v2515_v58   ;;  %v1581_v2 = vadd.f32 %v3030_v35, %v1580_v59  ;;  %v1713_v3 = vadd.f32 %v1712_v57, %v1650_v60  ;;  %v1652_v10 = vmul.f32 %v3031_v47, %v3031_v47 }
 0x16c   :  { %v2954_v4 = vpop.f32.mrb[32].mxu0  ;;  %v834_v6 = vadd.f32 %v833_v63, %v771_v61  ;;  %2806 = vst [vmem:[#allocation9 + $0x70] sm:$0xff] %v2675_v0   ;;  %v702_v9 = vadd.f32 %v2951_v43, %v701_v62 }
 0x16d   :  { %v3034_v7 = vpop.f32.mrb[32].mxu1  ;;  %v545_v8 = vpop.f32.mrb[33].mxu0  ;;  %v1714_v11 = vadd.f32 %v1713_v3, %v1651_v1  ;;  %v1582_v14 = vadd.f32 %v3031_v47, %v1581_v2  ;;  %v775_v33 = vmul.f32 %v2954_v4, %v2954_v4 }
 0x16e   :  { %v773_v12 = vmul.f32 %v545_v8, %v545_v8  ;;  %v1425_v13 = vpop.f32.mrb[33].mxu1  ;;  %v2955_v15 = vpop.f32.mrb[34].mxu0  ;;  %v703_v16 = vadd.f32 %v702_v9, %v545_v8  ;;  %v835_v17 = vadd.f32 %v834_v6, %v772_v5  ;;  %v1655_v37 = vmul.f32 %v3034_v7, %v3034_v7 }
 0x16f   :  { %v1653_v18 = vmul.f32 %v1425_v13, %v1425_v13  ;;  %v3035_v19 = vpop.f32.mrb[34].mxu1  ;;  %v548_v20 = vpop.f32.mrb[35].mxu0  ;;  %v1583_v21 = vadd.f32 %v1582_v14, %v1425_v13  ;;  %v1715_v22 = vadd.f32 %v1714_v11, %v1652_v10  ;;  %v2530_v23 = vpack.c.bf16 %v2955_v15, %v2954_v4 }
 0x170   :  { %v1428_v24 = vpop.f32.mrb[35].mxu1  ;;  %v836_v25 = vadd.f32 %v835_v17, %v773_v12  ;;  %v2690_v26 = vpack.c.bf16 %v3035_v19, %v3034_v7  ;;  %v704_v27 = vadd.f32 %v703_v16, %v548_v20  ;;  %v774_v28 = vmul.f32 %v548_v20, %v548_v20 }
 0x171   :  { %v1716_v29 = vadd.f32 %v1715_v22, %v1653_v18  ;;  %2778 = vst [vmem:[#allocation8 + $0x88] sm:$0xff] %v2530_v23   ;;  %v2525_v30 = vpack.c.bf16 %v548_v20, %v545_v8  ;;  %v1584_v31 = vadd.f32 %v1583_v21, %v1428_v24  ;;  %v1654_v32 = vmul.f32 %v1428_v24, %v1428_v24 }
 0x172   :  { %2809 = vst [vmem:[#allocation9 + $0x88] sm:$0xff] %v2690_v26   ;;  %v705_v34 = vadd.f32 %v2954_v4, %v704_v27  ;;  %v837_v35 = vadd.f32 %v836_v25, %v774_v28  ;;  %v2685_v36 = vpack.c.bf16 %v1428_v24, %v1425_v13  ;;  %v776_v41 = vmul.f32 %v2955_v15, %v2955_v15 }
 0x173   :  { %2777 = vst [vmem:[#allocation8 + $0x80] sm:$0xff] %v2525_v30   ;;  %v1585_v38 = vadd.f32 %v3034_v7, %v1584_v31  ;;  %v1717_v39 = vadd.f32 %v1716_v29, %v1654_v32  ;;  %v1656_v46 = vmul.f32 %v3035_v19, %v3035_v19 }
 0x174   :  { %v2958_v40 = vpop.f32.mrb[36].mxu0  ;;  %v838_v42 = vadd.f32 %v837_v35, %v775_v33  ;;  %2808 = vst [vmem:[#allocation9 + $0x80] sm:$0xff] %v2685_v36   ;;  %v706_v45 = vadd.f32 %v2955_v15, %v705_v34 }
 0x175   :  { %v3038_v43 = vpop.f32.mrb[36].mxu1  ;;  %v561_v44 = vpop.f32.mrb[37].mxu0  ;;  %v1718_v47 = vadd.f32 %v1717_v39, %v1655_v37  ;;  %v1586_v50 = vadd.f32 %v3035_v19, %v1585_v38  ;;  %v779_v5 = vmul.f32 %v2958_v40, %v2958_v40 }
 0x176   :  { %v777_v48 = vmul.f32 %v561_v44, %v561_v44  ;;  %v1441_v49 = vpop.f32.mrb[37].mxu1  ;;  %v2959_v51 = vpop.f32.mrb[38].mxu0  ;;  %v707_v52 = vadd.f32 %v706_v45, %v561_v44  ;;  %v839_v53 = vadd.f32 %v838_v42, %v776_v41  ;;  %v1659_v9 = vmul.f32 %v3038_v43, %v3038_v43 }
 0x177   :  { %v1657_v54 = vmul.f32 %v1441_v49, %v1441_v49  ;;  %v3039_v55 = vpop.f32.mrb[38].mxu1  ;;  %v564_v56 = vpop.f32.mrb[39].mxu0  ;;  %v1587_v57 = vadd.f32 %v1586_v50, %v1441_v49  ;;  %v1719_v58 = vadd.f32 %v1718_v47, %v1656_v46  ;;  %v2540_v59 = vpack.c.bf16 %v2959_v51, %v2958_v40 }
 0x178   :  { %v1444_v60 = vpop.f32.mrb[39].mxu1  ;;  %v840_v61 = vadd.f32 %v839_v53, %v777_v48  ;;  %v2700_v62 = vpack.c.bf16 %v3039_v55, %v3038_v43  ;;  %v708_v63 = vadd.f32 %v707_v52, %v564_v56  ;;  %v778_v0 = vmul.f32 %v564_v56, %v564_v56 }
 0x179   :  { %v1720_v1 = vadd.f32 %v1719_v58, %v1657_v54  ;;  %2780 = vst [vmem:[#allocation8 + $0x98] sm:$0xff] %v2540_v59   ;;  %v2535_v2 = vpack.c.bf16 %v564_v56, %v561_v44  ;;  %v1588_v3 = vadd.f32 %v1587_v57, %v1444_v60  ;;  %v1658_v4 = vmul.f32 %v1444_v60, %v1444_v60 }
 0x17a   :  { %2811 = vst [vmem:[#allocation9 + $0x98] sm:$0xff] %v2700_v62   ;;  %v709_v6 = vadd.f32 %v2958_v40, %v708_v63  ;;  %v841_v7 = vadd.f32 %v840_v61, %v778_v0  ;;  %v2695_v8 = vpack.c.bf16 %v1444_v60, %v1441_v49  ;;  %v780_v13 = vmul.f32 %v2959_v51, %v2959_v51 }
 0x17b   :  { %2779 = vst [vmem:[#allocation8 + $0x90] sm:$0xff] %v2535_v2   ;;  %v1589_v10 = vadd.f32 %v3038_v43, %v1588_v3  ;;  %v1721_v11 = vadd.f32 %v1720_v1, %v1658_v4  ;;  %v1660_v18 = vmul.f32 %v3039_v55, %v3039_v55 }
 0x17c   :  { %v2962_v12 = vpop.f32.mrb[40].mxu0  ;;  %v842_v14 = vadd.f32 %v841_v7, %v779_v5  ;;  %2810 = vst [vmem:[#allocation9 + $0x90] sm:$0xff] %v2695_v8   ;;  %v710_v17 = vadd.f32 %v2959_v51, %v709_v6 }
 0x17d   :  { %v3042_v15 = vpop.f32.mrb[40].mxu1  ;;  %v577_v16 = vpop.f32.mrb[41].mxu0  ;;  %v1722_v19 = vadd.f32 %v1721_v11, %v1659_v9  ;;  %v1590_v22 = vadd.f32 %v3039_v55, %v1589_v10  ;;  %v783_v41 = vmul.f32 %v2962_v12, %v2962_v12 }
 0x17e   :  { %v781_v20 = vmul.f32 %v577_v16, %v577_v16  ;;  %v1457_v21 = vpop.f32.mrb[41].mxu1  ;;  %v2963_v23 = vpop.f32.mrb[42].mxu0  ;;  %v711_v24 = vadd.f32 %v710_v17, %v577_v16  ;;  %v843_v25 = vadd.f32 %v842_v14, %v780_v13  ;;  %v1663_v45 = vmul.f32 %v3042_v15, %v3042_v15 }
 0x17f   :  { %v1661_v26 = vmul.f32 %v1457_v21, %v1457_v21  ;;  %v3043_v27 = vpop.f32.mrb[42].mxu1  ;;  %v580_v28 = vpop.f32.mrb[43].mxu0  ;;  %v1591_v29 = vadd.f32 %v1590_v22, %v1457_v21  ;;  %v1723_v30 = vadd.f32 %v1722_v19, %v1660_v18  ;;  %v2550_v31 = vpack.c.bf16 %v2963_v23, %v2962_v12 }
 0x180   :  { %v1460_v32 = vpop.f32.mrb[43].mxu1  ;;  %v844_v33 = vadd.f32 %v843_v25, %v781_v20  ;;  %v2710_v34 = vpack.c.bf16 %v3043_v27, %v3042_v15  ;;  %v712_v35 = vadd.f32 %v711_v24, %v580_v28  ;;  %v782_v36 = vmul.f32 %v580_v28, %v580_v28 }
 0x181   :  { %v1724_v37 = vadd.f32 %v1723_v30, %v1661_v26  ;;  %2782 = vst [vmem:[#allocation8 + $0xa8] sm:$0xff] %v2550_v31   ;;  %v2545_v38 = vpack.c.bf16 %v580_v28, %v577_v16  ;;  %v1592_v39 = vadd.f32 %v1591_v29, %v1460_v32  ;;  %v1662_v40 = vmul.f32 %v1460_v32, %v1460_v32 }
 0x182   :  { %2813 = vst [vmem:[#allocation9 + $0xa8] sm:$0xff] %v2710_v34   ;;  %v713_v42 = vadd.f32 %v2962_v12, %v712_v35  ;;  %v845_v43 = vadd.f32 %v844_v33, %v782_v36  ;;  %v2705_v44 = vpack.c.bf16 %v1460_v32, %v1457_v21  ;;  %v784_v49 = vmul.f32 %v2963_v23, %v2963_v23 }
 0x183   :  { %2781 = vst [vmem:[#allocation8 + $0xa0] sm:$0xff] %v2545_v38   ;;  %v1593_v46 = vadd.f32 %v3042_v15, %v1592_v39  ;;  %v1725_v47 = vadd.f32 %v1724_v37, %v1662_v40  ;;  %v1664_v54 = vmul.f32 %v3043_v27, %v3043_v27 }
 0x184   :  { %v2966_v48 = vpop.f32.mrb[44].mxu0  ;;  %v846_v50 = vadd.f32 %v845_v43, %v783_v41  ;;  %2812 = vst [vmem:[#allocation9 + $0xa0] sm:$0xff] %v2705_v44   ;;  %v714_v53 = vadd.f32 %v2963_v23, %v713_v42 }
 0x185   :  { %v3046_v51 = vpop.f32.mrb[44].mxu1  ;;  %v593_v52 = vpop.f32.mrb[45].mxu0  ;;  %v1726_v55 = vadd.f32 %v1725_v47, %v1663_v45  ;;  %v1594_v58 = vadd.f32 %v3043_v27, %v1593_v46  ;;  %v787_v13 = vmul.f32 %v2966_v48, %v2966_v48 }
 0x186   :  { %v785_v56 = vmul.f32 %v593_v52, %v593_v52  ;;  %v1473_v57 = vpop.f32.mrb[45].mxu1  ;;  %v2967_v59 = vpop.f32.mrb[46].mxu0  ;;  %v715_v60 = vadd.f32 %v714_v53, %v593_v52  ;;  %v847_v61 = vadd.f32 %v846_v50, %v784_v49  ;;  %v1667_v17 = vmul.f32 %v3046_v51, %v3046_v51 }
 0x187   :  { %v1665_v62 = vmul.f32 %v1473_v57, %v1473_v57  ;;  %v3047_v63 = vpop.f32.mrb[46].mxu1  ;;  %v596_v0 = vpop.f32.mrb[47].mxu0  ;;  %v1595_v1 = vadd.f32 %v1594_v58, %v1473_v57  ;;  %v1727_v2 = vadd.f32 %v1726_v55, %v1664_v54  ;;  %v2560_v3 = vpack.c.bf16 %v2967_v59, %v2966_v48 }
 0x188   :  { %v1476_v4 = vpop.f32.mrb[47].mxu1  ;;  %v848_v5 = vadd.f32 %v847_v61, %v785_v56  ;;  %v2720_v6 = vpack.c.bf16 %v3047_v63, %v3046_v51  ;;  %v716_v7 = vadd.f32 %v715_v60, %v596_v0  ;;  %v786_v8 = vmul.f32 %v596_v0, %v596_v0 }
 0x189   :  { %v1728_v9 = vadd.f32 %v1727_v2, %v1665_v62  ;;  %2784 = vst [vmem:[#allocation8 + $0xb8] sm:$0xff] %v2560_v3   ;;  %v2555_v10 = vpack.c.bf16 %v596_v0, %v593_v52  ;;  %v1596_v11 = vadd.f32 %v1595_v1, %v1476_v4  ;;  %v1666_v12 = vmul.f32 %v1476_v4, %v1476_v4 }
 0x18a   :  { %2815 = vst [vmem:[#allocation9 + $0xb8] sm:$0xff] %v2720_v6   ;;  %v717_v14 = vadd.f32 %v2966_v48, %v716_v7  ;;  %v849_v15 = vadd.f32 %v848_v5, %v786_v8  ;;  %v2715_v16 = vpack.c.bf16 %v1476_v4, %v1473_v57  ;;  %v788_v21 = vmul.f32 %v2967_v59, %v2967_v59 }
 0x18b   :  { %2783 = vst [vmem:[#allocation8 + $0xb0] sm:$0xff] %v2555_v10   ;;  %v1597_v18 = vadd.f32 %v3046_v51, %v1596_v11  ;;  %v1729_v19 = vadd.f32 %v1728_v9, %v1666_v12  ;;  %v1668_v26 = vmul.f32 %v3047_v63, %v3047_v63 }
 0x18c   :  { %v2970_v20 = vpop.f32.mrb[48].mxu0  ;;  %v850_v22 = vadd.f32 %v849_v15, %v787_v13  ;;  %2814 = vst [vmem:[#allocation9 + $0xb0] sm:$0xff] %v2715_v16   ;;  %v718_v25 = vadd.f32 %v2967_v59, %v717_v14 }
 0x18d   :  { %v3050_v23 = vpop.f32.mrb[48].mxu1  ;;  %v609_v24 = vpop.f32.mrb[49].mxu0  ;;  %v1730_v27 = vadd.f32 %v1729_v19, %v1667_v17  ;;  %v1598_v30 = vadd.f32 %v3047_v63, %v1597_v18  ;;  %v791_v49 = vmul.f32 %v2970_v20, %v2970_v20 }
 0x18e   :  { %v789_v28 = vmul.f32 %v609_v24, %v609_v24  ;;  %v1489_v29 = vpop.f32.mrb[49].mxu1  ;;  %v2971_v31 = vpop.f32.mrb[50].mxu0  ;;  %v719_v32 = vadd.f32 %v718_v25, %v609_v24  ;;  %v851_v33 = vadd.f32 %v850_v22, %v788_v21  ;;  %v1671_v53 = vmul.f32 %v3050_v23, %v3050_v23 }
 0x18f   :  { %v1669_v34 = vmul.f32 %v1489_v29, %v1489_v29  ;;  %v3051_v35 = vpop.f32.mrb[50].mxu1  ;;  %v612_v36 = vpop.f32.mrb[51].mxu0  ;;  %v1599_v37 = vadd.f32 %v1598_v30, %v1489_v29  ;;  %v1731_v38 = vadd.f32 %v1730_v27, %v1668_v26  ;;  %v2570_v39 = vpack.c.bf16 %v2971_v31, %v2970_v20 }
 0x190   :  { %v1492_v40 = vpop.f32.mrb[51].mxu1  ;;  %v852_v41 = vadd.f32 %v851_v33, %v789_v28  ;;  %v2730_v42 = vpack.c.bf16 %v3051_v35, %v3050_v23  ;;  %v720_v43 = vadd.f32 %v719_v32, %v612_v36  ;;  %v790_v44 = vmul.f32 %v612_v36, %v612_v36 }
 0x191   :  { %v1732_v45 = vadd.f32 %v1731_v38, %v1669_v34  ;;  %2786 = vst [vmem:[#allocation8 + $0xc8] sm:$0xff] %v2570_v39   ;;  %v2565_v46 = vpack.c.bf16 %v612_v36, %v609_v24  ;;  %v1600_v47 = vadd.f32 %v1599_v37, %v1492_v40  ;;  %v1670_v48 = vmul.f32 %v1492_v40, %v1492_v40 }
 0x192   :  { %2817 = vst [vmem:[#allocation9 + $0xc8] sm:$0xff] %v2730_v42   ;;  %v721_v50 = vadd.f32 %v2970_v20, %v720_v43  ;;  %v853_v51 = vadd.f32 %v852_v41, %v790_v44  ;;  %v2725_v52 = vpack.c.bf16 %v1492_v40, %v1489_v29  ;;  %v792_v57 = vmul.f32 %v2971_v31, %v2971_v31 }
 0x193   :  { %2785 = vst [vmem:[#allocation8 + $0xc0] sm:$0xff] %v2565_v46   ;;  %v1601_v54 = vadd.f32 %v3050_v23, %v1600_v47  ;;  %v1733_v55 = vadd.f32 %v1732_v45, %v1670_v48  ;;  %v1672_v62 = vmul.f32 %v3051_v35, %v3051_v35 }
 0x194   :  { %v2974_v56 = vpop.f32.mrb[52].mxu0  ;;  %v854_v58 = vadd.f32 %v853_v51, %v791_v49  ;;  %2816 = vst [vmem:[#allocation9 + $0xc0] sm:$0xff] %v2725_v52   ;;  %v722_v61 = vadd.f32 %v2971_v31, %v721_v50 }
 0x195   :  { %v3054_v59 = vpop.f32.mrb[52].mxu1  ;;  %v625_v60 = vpop.f32.mrb[53].mxu0  ;;  %v1734_v63 = vadd.f32 %v1733_v55, %v1671_v53  ;;  %v1602_v2 = vadd.f32 %v3051_v35, %v1601_v54  ;;  %v795_v21 = vmul.f32 %v2974_v56, %v2974_v56 }
 0x196   :  { %v793_v0 = vmul.f32 %v625_v60, %v625_v60  ;;  %v1505_v1 = vpop.f32.mrb[53].mxu1  ;;  %v2975_v3 = vpop.f32.mrb[54].mxu0  ;;  %v723_v4 = vadd.f32 %v722_v61, %v625_v60  ;;  %v855_v5 = vadd.f32 %v854_v58, %v792_v57  ;;  %v1675_v25 = vmul.f32 %v3054_v59, %v3054_v59 }
 0x197   :  { %v1673_v6 = vmul.f32 %v1505_v1, %v1505_v1  ;;  %v3055_v7 = vpop.f32.mrb[54].mxu1  ;;  %v628_v8 = vpop.f32.mrb[55].mxu0  ;;  %v1603_v9 = vadd.f32 %v1602_v2, %v1505_v1  ;;  %v1735_v10 = vadd.f32 %v1734_v63, %v1672_v62  ;;  %v2580_v11 = vpack.c.bf16 %v2975_v3, %v2974_v56 }
 0x198   :  { %v1508_v12 = vpop.f32.mrb[55].mxu1  ;;  %v856_v13 = vadd.f32 %v855_v5, %v793_v0  ;;  %v2740_v14 = vpack.c.bf16 %v3055_v7, %v3054_v59  ;;  %v724_v15 = vadd.f32 %v723_v4, %v628_v8  ;;  %v794_v16 = vmul.f32 %v628_v8, %v628_v8 }
 0x199   :  { %v1736_v17 = vadd.f32 %v1735_v10, %v1673_v6  ;;  %2788 = vst [vmem:[#allocation8 + $0xd8] sm:$0xff] %v2580_v11   ;;  %v2575_v18 = vpack.c.bf16 %v628_v8, %v625_v60  ;;  %v1604_v19 = vadd.f32 %v1603_v9, %v1508_v12  ;;  %v1674_v20 = vmul.f32 %v1508_v12, %v1508_v12 }
 0x19a   :  { %2819 = vst [vmem:[#allocation9 + $0xd8] sm:$0xff] %v2740_v14   ;;  %v725_v22 = vadd.f32 %v2974_v56, %v724_v15  ;;  %v857_v23 = vadd.f32 %v856_v13, %v794_v16  ;;  %v2735_v24 = vpack.c.bf16 %v1508_v12, %v1505_v1  ;;  %v796_v29 = vmul.f32 %v2975_v3, %v2975_v3 }
 0x19b   :  { %2787 = vst [vmem:[#allocation8 + $0xd0] sm:$0xff] %v2575_v18   ;;  %v1605_v26 = vadd.f32 %v3054_v59, %v1604_v19  ;;  %v1737_v27 = vadd.f32 %v1736_v17, %v1674_v20  ;;  %v1676_v34 = vmul.f32 %v3055_v7, %v3055_v7 }
 0x19c   :  { %v2978_v28 = vpop.f32.mrb[56].mxu0  ;;  %v858_v30 = vadd.f32 %v857_v23, %v795_v21  ;;  %2818 = vst [vmem:[#allocation9 + $0xd0] sm:$0xff] %v2735_v24   ;;  %v726_v33 = vadd.f32 %v2975_v3, %v725_v22 }
 0x19d   :  { %v3058_v31 = vpop.f32.mrb[56].mxu1  ;;  %v641_v32 = vpop.f32.mrb[57].mxu0  ;;  %v1738_v35 = vadd.f32 %v1737_v27, %v1675_v25  ;;  %v1606_v38 = vadd.f32 %v3055_v7, %v1605_v26  ;;  %v799_v57 = vmul.f32 %v2978_v28, %v2978_v28 }
 0x19e   :  { %v797_v36 = vmul.f32 %v641_v32, %v641_v32  ;;  %v1521_v37 = vpop.f32.mrb[57].mxu1  ;;  %v2979_v39 = vpop.f32.mrb[58].mxu0  ;;  %v727_v40 = vadd.f32 %v726_v33, %v641_v32  ;;  %v859_v41 = vadd.f32 %v858_v30, %v796_v29  ;;  %v1679_v61 = vmul.f32 %v3058_v31, %v3058_v31 }
 0x19f   :  { %v1677_v42 = vmul.f32 %v1521_v37, %v1521_v37  ;;  %v3059_v43 = vpop.f32.mrb[58].mxu1  ;;  %v644_v44 = vpop.f32.mrb[59].mxu0  ;;  %v1607_v45 = vadd.f32 %v1606_v38, %v1521_v37  ;;  %v1739_v46 = vadd.f32 %v1738_v35, %v1676_v34  ;;  %v2590_v47 = vpack.c.bf16 %v2979_v39, %v2978_v28 }
 0x1a0   :  { %v1524_v48 = vpop.f32.mrb[59].mxu1  ;;  %v860_v49 = vadd.f32 %v859_v41, %v797_v36  ;;  %v2750_v50 = vpack.c.bf16 %v3059_v43, %v3058_v31  ;;  %v728_v51 = vadd.f32 %v727_v40, %v644_v44  ;;  %v798_v52 = vmul.f32 %v644_v44, %v644_v44 }
 0x1a1   :  { %v1740_v53 = vadd.f32 %v1739_v46, %v1677_v42  ;;  %2790 = vst [vmem:[#allocation8 + $0xe8] sm:$0xff] %v2590_v47   ;;  %v2585_v54 = vpack.c.bf16 %v644_v44, %v641_v32  ;;  %v1608_v55 = vadd.f32 %v1607_v45, %v1524_v48  ;;  %v1678_v56 = vmul.f32 %v1524_v48, %v1524_v48 }
 0x1a2   :  { %2821 = vst [vmem:[#allocation9 + $0xe8] sm:$0xff] %v2750_v50   ;;  %v729_v58 = vadd.f32 %v2978_v28, %v728_v51  ;;  %v861_v59 = vadd.f32 %v860_v49, %v798_v52  ;;  %v2745_v60 = vpack.c.bf16 %v1524_v48, %v1521_v37  ;;  %v800_v1 = vmul.f32 %v2979_v39, %v2979_v39 }
 0x1a3   :  { %2789 = vst [vmem:[#allocation8 + $0xe0] sm:$0xff] %v2585_v54   ;;  %v1609_v62 = vadd.f32 %v3058_v31, %v1608_v55  ;;  %v1741_v63 = vadd.f32 %v1740_v53, %v1678_v56  ;;  %v1680_v6 = vmul.f32 %v3059_v43, %v3059_v43 }
 0x1a4   :  { %v2982_v0 = vpop.f32.mrb[60].mxu0  ;;  %v862_v2 = vadd.f32 %v861_v59, %v799_v57  ;;  %2820 = vst [vmem:[#allocation9 + $0xe0] sm:$0xff] %v2745_v60   ;;  %v730_v5 = vadd.f32 %v2979_v39, %v729_v58 }
 0x1a5   :  { %v3062_v3 = vpop.f32.mrb[60].mxu1  ;;  %v657_v4 = vpop.f32.mrb[61].mxu0  ;;  %v1742_v7 = vadd.f32 %v1741_v63, %v1679_v61  ;;  %v1610_v10 = vadd.f32 %v3059_v43, %v1609_v62  ;;  %v803_v29 = vmul.f32 %v2982_v0, %v2982_v0 }
 0x1a6   :  { %v801_v8 = vmul.f32 %v657_v4, %v657_v4  ;;  %v1537_v9 = vpop.f32.mrb[61].mxu1  ;;  %v2983_v11 = vpop.f32.mrb[62].mxu0  ;;  %v731_v12 = vadd.f32 %v730_v5, %v657_v4  ;;  %v863_v13 = vadd.f32 %v862_v2, %v800_v1  ;;  %v1683_v33 = vmul.f32 %v3062_v3, %v3062_v3 }
 0x1a7   :  { %v1681_v14 = vmul.f32 %v1537_v9, %v1537_v9  ;;  %v3063_v15 = vpop.f32.mrb[62].mxu1  ;;  %v660_v16 = vpop.f32.mrb[63].mxu0  ;;  %v1611_v17 = vadd.f32 %v1610_v10, %v1537_v9  ;;  %v1743_v18 = vadd.f32 %v1742_v7, %v1680_v6  ;;  %v2600_v19 = vpack.c.bf16 %v2983_v11, %v2982_v0 }
 0x1a8   :  { %v1540_v20 = vpop.f32.mrb[63].mxu1  ;;  %v864_v21 = vadd.f32 %v863_v13, %v801_v8  ;;  %v2760_v22 = vpack.c.bf16 %v3063_v15, %v3062_v3  ;;  %v732_v23 = vadd.f32 %v731_v12, %v660_v16  ;;  %v802_v24 = vmul.f32 %v660_v16, %v660_v16 }
 0x1a9   :  { %v1744_v25 = vadd.f32 %v1743_v18, %v1681_v14  ;;  %2792 = vst [vmem:[#allocation8 + $0xf8] sm:$0xff] %v2600_v19   ;;  %v2595_v26 = vpack.c.bf16 %v660_v16, %v657_v4  ;;  %v1612_v27 = vadd.f32 %v1611_v17, %v1540_v20  ;;  %v1682_v28 = vmul.f32 %v1540_v20, %v1540_v20 }
 0x1aa   :  { %2823 = vst [vmem:[#allocation9 + $0xf8] sm:$0xff] %v2760_v22   ;;  %v733_v30 = vadd.f32 %v2982_v0, %v732_v23  ;;  %v865_v31 = vadd.f32 %v864_v21, %v802_v24  ;;  %v2755_v32 = vpack.c.bf16 %v1540_v20, %v1537_v9  ;;  %v804_v36 = vmul.f32 %v2983_v11, %v2983_v11 }
 0x1ab   :  { %2791 = vst [vmem:[#allocation8 + $0xf0] sm:$0xff] %v2595_v26   ;;  %v1613_v34 = vadd.f32 %v3062_v3, %v1612_v27  ;;  %v1745_v35 = vadd.f32 %v1744_v25, %v1682_v28 }
 0x1ac   :  { %v734_v37 = vadd.f32 %v2983_v11, %v733_v30  ;;  %v866_v38 = vadd.f32 %v865_v31, %v803_v29  ;;  %2822 = vst [vmem:[#allocation9 + $0xf0] sm:$0xff] %v2755_v32  }
 0x1ad   :  { %3198 = shalt.err (!%p3195_p0)
}
 0x1ae   :  { %s3199_s17 = scalar_lea.hbm %s3459_s3, 4096 }
 0x1af   :  { %p3200_p1 = scmp.ne.s32.totalorder %s3459_s3, %s3199_s17  ;;  %p3203_p2 = scmp.lt.u32.totalorder %s3199_s17, %s3459_s3 }
 0x1b1   :  { %p3205_p3 = pnand %p3203_p2, %p3200_p1 }
 0x1b3   :  { %3208 = shalt.err (!%p3205_p3)
}
 0x1b4   :  { %2088 = dma.vmem_to_hbm [thread:$0]  %s3381_s11, 4096, %s3459_s3, [#allocation4], %s3287_s9, %s3287_s9, %s3288_s10   ;;  %v1684_v39 = vmul.f32 %v3063_v15, %v3063_v15  ;;  %v1614_v40 = vadd.f32 %v3063_v15, %v1613_v34  ;;  %v1746_v41 = vadd.f32 %v1745_v35, %v1683_v33 }
 0x1b5   :  { %s3209_s23 = scalar_lea.vmem %s3383_s13, 4096  ;;  %p3214_p5 = scmp.lt.s32.totalorder %s3383_s13, %s3383_s13 }
 0x1b6   :  { %p3210_p4 = scmp.ne.s32.totalorder %s3383_s13, %s3209_s23  ;;  %p3215_p6 = scmp.lt.s32.totalorder %s3209_s23, %s3209_s23 }
 0x1b8   :  { %p3216_p7 = por %p3215_p6, %p3214_p5 }
 0x1ba   :  { %p3217_p8 = pnand %p3216_p7, %p3210_p4 }
 0x1bc   :  { %3220 = shalt.err (!%p3217_p8)
}
 0x1bd   :  { %s3221_s27 = scalar_lea.hbm %s3460_s4, 4096 }
 0x1be   :  { %p3222_p9 = scmp.ne.s32.totalorder %s3460_s4, %s3221_s27  ;;  %p3225_p10 = scmp.lt.u32.totalorder %s3221_s27, %s3460_s4 }
 0x1c0   :  { %p3227_p11 = pnand %p3225_p10, %p3222_p9 }
 0x1c2   :  { %3230 = shalt.err (!%p3227_p11)
}
 0x1c3   :  { %2100 = dma.vmem_to_hbm [thread:$0]  %s3383_s13, 4096, %s3460_s4, [#allocation10], %s3287_s9, %s3287_s9, %s3288_s10   ;;  %v735_v42 = vrot.slane %v734_v37, 4  ;;  %v867_v43 = vadd.f32 %v866_v38, %v804_v36  ;;  %v1615_v44 = vrot.slane %v1614_v40, 4  ;;  %v1747_v45 = vadd.f32 %v1746_v41, %v1684_v39 }
 0x1c4   :  { %vm874_vm0 = vcmask 1040384   ;;  %s3292_s4 = smov [#allocation11]   ;;  %vm876_vm1 = vcmask 1041408   ;;  %s3293_s10 = smov [#allocation12]  }
 0x1c5   :  { %v736_v46 = vadd.f32 %v735_v42, %v734_v37  ;;  %v868_v47 = vrot.slane %v867_v43, 4  ;;  %v1616_v48 = vadd.f32 %v1615_v44, %v1614_v40  ;;  %v1748_v49 = vrot.slane %v1747_v45, 4  ;;  %s2107_s9 = sshll.u32 %s3292_s4, 4  ;;  %s2117_s0 = sshll.u32 %s3293_s10, 4  ;;  %s2108_s9 = int_to_ptr.vmem [resolvable:$true] %s2107_s9  ;;  %s3425_s0 = int_to_ptr.vmem [resolvable:$true] %s2117_s0 }
 0x1c6   :  { %s3231_s24 = scalar_lea.vmem %s2108_s9, 128  ;;  %p3236_p13 = scmp.lt.s32.totalorder %s2108_s9, %s2108_s9 }
 0x1c7   :  { %v737_v50 = vrot.slane %v736_v46, 2  ;;  %v869_v51 = vadd.f32 %v868_v47, %v867_v43  ;;  %v1617_v52 = vrot.slane %v1616_v48, 2  ;;  %v1749_v53 = vadd.f32 %v1748_v49, %v1747_v45  ;;  %p3232_p12 = scmp.ne.s32.totalorder %s2108_s9, %s3231_s24  ;;  %p3237_p0 = scmp.lt.s32.totalorder %s3231_s24, %s3231_s24 }
 0x1c9   :  { %v738_v54 = vadd.f32 %v737_v50, %v736_v46  ;;  %v870_v55 = vrot.slane %v869_v51, 2  ;;  %v1618_v56 = vadd.f32 %v1617_v52, %v1616_v48  ;;  %v1750_v57 = vrot.slane %v1749_v53, 2  ;;  %p3238_p1 = por %p3237_p0, %p3236_p13 }
 0x1cb   :  { %v739_v58 = vrot.slane %v738_v54, 1  ;;  %v871_v59 = vadd.f32 %v870_v55, %v869_v51  ;;  %v1619_v60 = vrot.slane %v1618_v56, 1  ;;  %v1751_v61 = vadd.f32 %v1750_v57, %v1749_v53  ;;  %p3239_p2 = pnand %p3238_p1, %p3232_p12 }
 0x1cd   :  { %v872_v62 = vrot.slane %v871_v59, 1  ;;  %v1752_v63 = vrot.slane %v1751_v61, 1  ;;  %v740_v0 = vadd.f32 %v739_v58, %v738_v54  ;;  %v1620_v2 = vadd.f32 %v1619_v60, %v1618_v56 }
 0x1cf   :  { %v873_v1 = vadd.f32 %v872_v62, %v871_v59  ;;  %v1753_v3 = vadd.f32 %v1752_v63, %v1751_v61 }
 0x1d1   :  { %v875_v4 = vsel %vm874_vm0, %v740_v0, %v873_v1  ;;  %v1754_v6 = vsel %vm874_vm0, %v1620_v2, %v1753_v3 }
 0x1d2   :  { %v877_v5 = vsel %vm876_vm1, %v875_v4, 0.0  ;;  %v1755_v7 = vsel %vm876_vm1, %v1754_v6, 0.0 }
 0x1d3   :  { %878 = vst [vmem:[#allocation11] sm:$0xff] %v877_v5 }
 0x1d4   :  { %3242 = shalt.err (!%p3239_p2)
}
 0x1d5   :  { %s3243_s12 = scalar_lea.hbm %s3461_s5, 128 }
 0x1d6   :  { %p3244_p3 = scmp.ne.s32.totalorder %s3461_s5, %s3243_s12  ;;  %p3247_p4 = scmp.lt.u32.totalorder %s3243_s12, %s3461_s5 }
 0x1d8   :  { %p3249_p5 = pnand %p3247_p4, %p3244_p3 }
 0x1da   :  { %3252 = shalt.err (!%p3249_p5)
}
 0x1db   :  { %2110 = dma.vmem_to_hbm [thread:$0]  %s2108_s9, 128, %s3461_s5, [#allocation10]   ;;  %1756 = vst [vmem:[#allocation12] sm:$0xff] %v1755_v7 }
 0x1dc   :  { %s3253_s19 = scalar_lea.vmem %s3425_s0, 128  ;;  %p3258_p7 = scmp.lt.s32.totalorder %s3425_s0, %s3425_s0 }
 0x1dd   :  { %p3254_p6 = scmp.ne.s32.totalorder %s3425_s0, %s3253_s19  ;;  %p3259_p8 = scmp.lt.s32.totalorder %s3253_s19, %s3253_s19 }
 0x1df   :  { %p3260_p9 = por %p3259_p8, %p3258_p7 }
 0x1e1   :  { %p3261_p10 = pnand %p3260_p9, %p3254_p6 }
 0x1e3   :  { %3264 = shalt.err (!%p3261_p10)
}
 0x1e4   :  { %s3265_s21 = scalar_lea.hbm %s3462_s6, 128 }
 0x1e5   :  { %p3266_p11 = scmp.ne.s32.totalorder %s3462_s6, %s3265_s21  ;;  %p3269_p12 = scmp.lt.u32.totalorder %s3265_s21, %s3462_s6 }
 0x1e7   :  { %p3271_p13 = pnand %p3269_p12, %p3266_p11 }
 0x1e9   :  { %3274 = shalt.err (!%p3271_p13)
}
 0x1ea   :  { %2120 = dma.vmem_to_hbm [thread:$0]  %s3425_s0, 128, %s3462_s6, [#allocation13]  }
 0x1eb   :  { %3279 = dma.done.wait [#allocation4], 4096  }
 0x1ec   :  { %3280 = vsyncadd [#allocation4], 4294963200 }
 0x1ed   :  { %3281 = dma.done.wait [#allocation10], 4224  }
 0x1ee   :  { %3282 = vsyncadd [#allocation10], 4294963072 }
 0x1ef   :  { %3283 = dma.done.wait [#allocation13], 128  }
 0x1f0   :  { %3284 = vsyncadd [#allocation13], 4294967168 }
 0x1f1   :  { %2133 = vsyncpa [#allocation3], 1 }
 0x1f2   :  { %2134 = vsyncpa [#allocation6], 1 }
 0x1f3   :  { %2135 = vsyncpa [#allocation4], 1 }
 0x1f4   :  { %2136 = vsyncpa [#allocation10], 1 }
 0x1f5   :  { %2137 = vsyncpa [#allocation13], 1 }

</bundles_post_ra>
